<compile_context>
chip_gen: v5e
topology: v5e:2x2
jax: 0.10.0
libtpu: 0.0.40
codegen_flags: <defaults>
</compile_context>

<pallas_src>
import jax
import jax.numpy as jnp
from jax.experimental import pallas as pl
from jax.experimental.pallas import tpu as pltpu

LANE = 128            # only the action-logit outputs are padded to this
F32 = jnp.float32
BF16 = jnp.bfloat16


# ---------------------------------------------------------------------------
# Pallas kernels
# ---------------------------------------------------------------------------
def _conv_stack_kernel(x_ref, w1_ref, b1_ref, w2_ref, b2_ref, o_ref, h1p_ref):
    """Fused encoder conv stack on a block of TB images.

    x_ref  : (TB, 9, 9, 4*Cin) f32   space-to-depth input, left/top zero halo
    w1_ref : (4, 4*Cin, C1)    bf16  stride-2 3x3 conv folded to 2x2 stride-1
    b1_ref : (1, C1)           f32
    w2_ref : (9, C1, C2)       bf16  3x3 stride-1 conv (pad 1)
    b2_ref : (1, C2)           f32
    o_ref  : (TB, 8, 8, C2)    bf16
    h1p_ref: (TB, 10, 10, C1)  f32   VMEM scratch = zero-padded conv1 output
    """
    tb, ho, wo, c2 = o_ref.shape
    cin = x_ref.shape[-1]
    c1 = w1_ref.shape[-1]

    # ----- conv1: folded 2x2 stride-1 shifted matmuls + bias + ReLU ---------
    acc = None
    for i in range(2):
        for j in range(2):
            patch = x_ref[:, i:i + ho, j:j + wo, :].reshape(tb * ho * wo, cin)
            part = jnp.dot(patch.astype(BF16), w1_ref[i * 2 + j],
                           preferred_element_type=jnp.float32)
            acc = part if acc is None else acc + part
    h1 = jnp.maximum(acc + b1_ref[...], 0.0)                    # (TB*64, C1)

    # ----- in-kernel zero halo for the 3x3/pad-1 conv2 (stays in VMEM) ------
    h1p_ref[...] = jnp.zeros_like(h1p_ref)
    h1p_ref[:, 1:1 + ho, 1:1 + wo, :] = h1.reshape(tb, ho, wo, c1)

    # ----- conv2: 3x3 stride-1; hoist the W (sublane) shift out of the taps -
    acc2 = None
    for j in range(3):
        xj = h1p_ref[:, :, j:j + wo, :].astype(BF16)            # (TB,10,8,C1)
        for i in range(3):
            patch = xj[:, i:i + ho, :, :].reshape(tb * ho * wo, c1)
            part = jnp.dot(patch, w2_ref[i * 3 + j],
                           preferred_element_type=jnp.float32)
            acc2 = part if acc2 is None else acc2 + part
    h2 = jnp.maximum(acc2 + b2_ref[...], 0.0)                   # (TB*64, C2)
    o_ref[...] = h2.reshape(tb, ho, wo, c2).astype(BF16)


def _make_head_kernel(actions_dim):
    """fc -> LayerNorm -> tanh -> 2xReLU MLP -> logits -> log_softmax/softmax.
    Hidden dim is the logical size (no masking); action columns are padded to
    128 lanes and masked out of the softmax."""

    def kernel(feat_ref, wfc_ref, bfc_ref, g_ref, beta_ref,
               w1_ref, b1_ref, w2_ref, b2_ref, w3_ref, b3_ref,
               logp_ref, probs_ref):
        hid = g_ref.shape[-1]
        # fc (single dot, whole w_fc resident) -> LayerNorm -> tanh
        h = jnp.dot(feat_ref[...], wfc_ref[...],
                    preferred_element_type=jnp.float32) + bfc_ref[...]
        mu = jnp.sum(h, axis=-1, keepdims=True) / hid
        d = h - mu
        var = jnp.sum(d * d, axis=-1, keepdims=True) / hid
        h = jnp.tanh(d * jax.lax.rsqrt(var + 1e-5) * g_ref[...] + beta_ref[...])
        # MLP(hidden_size, 2, outputs=actions_dim): 2 ReLU layers + linear
        h = jnp.maximum(
            jnp.dot(h.astype(BF16), w1_ref[...],
                    preferred_element_type=jnp.float32) + b1_ref[...], 0.0)
        h = jnp.maximum(
            jnp.dot(h.astype(BF16), w2_ref[...],
                    preferred_element_type=jnp.float32) + b2_ref[...], 0.0)
        logits = jnp.dot(h.astype(BF16), w3_ref[...],
                         preferred_element_type=jnp.float32) + b3_ref[...]
        # mask padded action columns, then numerically-stable log_softmax
        amask = jax.lax.broadcasted_iota(jnp.int32, logits.shape, 1) < actions_dim
        logits = jnp.where(amask, logits, -1e30)
        m = jnp.max(logits, axis=-1, keepdims=True)
        s = logits - m
        lse = jnp.log(jnp.sum(jnp.exp(s), axis=-1, keepdims=True))
        logp = s - lse
        logp_ref[...] = logp
        probs_ref[...] = jnp.exp(logp)   # exact exp(log_prob) == probs

    return kernel


# ---------------------------------------------------------------------------
# pallas_call wrappers
# ---------------------------------------------------------------------------
def _batch_block(batch):
    # Whole batch per grid step when small; otherwise 8-image blocks so block
    # sublane dims stay 8-aligned and the axis can shard across TensorCores.
    tb = batch if batch <= 8 else 8
    assert batch % tb == 0, "batch must be divisible by the block size"
    return tb


def conv_stack(xb, params):
    """xb: (B, 9, 9, 4*Cin) f32 (space-to-depth, left/top-padded input)."""
    B, Hp, Wp, Cin = xb.shape
    KK1, _, C1 = params["conv1_w"].shape
    KK2, _, C2 = params["conv2_w"].shape
    Ho, Wo = Hp - 1, Wp - 1                       # 2x2 stride-1 -> 8x8
    TB = _batch_block(B)
    flops = int(2 * B * Ho * Wo * (KK1 * Cin * C1 + KK2 * C1 * C2))
    bytes_acc = int(xb.size * 4 + params["conv1_w"].size * 2
                    + params["conv2_w"].size * 2 + B * Ho * Wo * C2 * 2)
    return pl.pallas_call(
        _conv_stack_kernel,
        out_shape=jax.ShapeDtypeStruct((B, Ho, Wo, C2), BF16),
        grid_spec=pltpu.PrefetchScalarGridSpec(
            num_scalar_prefetch=0,
            grid=(B // TB,),
            in_specs=[
                pl.BlockSpec((TB, Hp, Wp, Cin), lambda b: (b, 0, 0, 0)),
                pl.BlockSpec((KK1, Cin, C1), lambda b: (0, 0, 0)),
                pl.BlockSpec((1, C1), lambda b: (0, 0)),
                pl.BlockSpec((KK2, C1, C2), lambda b: (0, 0, 0)),
                pl.BlockSpec((1, C2), lambda b: (0, 0)),
            ],
            out_specs=pl.BlockSpec((TB, Ho, Wo, C2), lambda b: (b, 0, 0, 0)),
            scratch_shapes=[pltpu.VMEM((TB, Ho + 2, Wo + 2, C1), F32)],
        ),
        compiler_params=pltpu.CompilerParams(
            dimension_semantics=("parallel",),
            vmem_limit_bytes=32 * 1024 * 1024),
        cost_estimate=pl.CostEstimate(flops=flops, transcendentals=0,
                                      bytes_accessed=bytes_acc),
    )(xb, params["conv1_w"], params["conv1_b"],
      params["conv2_w"], params["conv2_b"])


def actor_head(feat, params, actions_dim):
    """feat: (B, flat) bf16 -> (log_softmax, softmax), each (B, 128)-padded."""
    B, FLAT = feat.shape
    HID = params["w_fc"].shape[1]
    AP = params["w3"].shape[1]
    TB = _batch_block(B)
    flops = int(2 * B * (FLAT * HID + 2 * HID * HID + HID * AP))
    bytes_acc = int(feat.size * 2 + params["w_fc"].size * 2
                    + (2 * HID * HID + HID * AP) * 2 + 2 * B * AP * 4)
    out_shape = (jax.ShapeDtypeStruct((B, AP), F32),
                 jax.ShapeDtypeStruct((B, AP), F32))
    const = lambda b: (0, 0)
    return pl.pallas_call(
        _make_head_kernel(actions_dim),
        out_shape=out_shape,
        grid_spec=pltpu.PrefetchScalarGridSpec(
            num_scalar_prefetch=0,
            grid=(B // TB,),
            in_specs=[
                pl.BlockSpec((TB, FLAT), lambda b: (b, 0)),   # feat (batch-tiled)
                pl.BlockSpec((FLAT, HID), const),             # w_fc (resident)
                pl.BlockSpec((1, HID), const),                # b_fc
                pl.BlockSpec((1, HID), const),                # ln_g
                pl.BlockSpec((1, HID), const),                # ln_b
                pl.BlockSpec((HID, HID), const),              # w1
                pl.BlockSpec((1, HID), const),                # b1
                pl.BlockSpec((HID, HID), const),              # w2
                pl.BlockSpec((1, HID), const),                # b2
                pl.BlockSpec((HID, AP), const),               # w3 (action-padded)
                pl.BlockSpec((1, AP), const),                 # b3
            ],
            out_specs=(pl.BlockSpec((TB, AP), lambda b: (b, 0)),
                       pl.BlockSpec((TB, AP), lambda b: (b, 0))),
        ),
        compiler_params=pltpu.CompilerParams(
            dimension_semantics=("parallel",),
            vmem_limit_bytes=32 * 1024 * 1024),
        cost_estimate=pl.CostEstimate(flops=flops,
                                      transcendentals=int(B * (HID + 2 * AP)),
                                      bytes_accessed=bytes_acc),
    )(feat, params["w_fc"], params["b_fc"], params["ln_g"], params["ln_b"],
      params["w1"], params["b1"], params["w2"], params["b2"],
      params["w3"], params["b3"])


# ---------------------------------------------------------------------------
# Layout folding of parameters (done once at init)
# ---------------------------------------------------------------------------
def _pad_row(v, n):
    v = v.reshape(1, -1)
    return jnp.pad(v, ((0, 0), (0, n - v.shape[-1])))


def _pad_mat(w, rows, cols):
    return jnp.pad(w, ((0, rows - w.shape[0]), (0, cols - w.shape[1])))


def _fold_stride2_conv_weight(w_hwio):
    """Fold a 3x3/stride-2/pad-1 HWIO weight into the equivalent 2x2 stride-1
    weight acting on the space-to-depth input (slot = (dy*2+dx)*Cin + c)."""
    kh, kw, cin, cout = w_hwio.shape
    w = jnp.zeros((2, 2, 4 * cin, cout), w_hwio.dtype)
    for p in range(2):
        for q in range(2):
            for dy in range(2):
                for dx in range(2):
                    i, j = 2 * p + dy - 1, 2 * q + dx - 1
                    if 0 <= i < kh and 0 <= j < kw:
                        s = (dy * 2 + dx) * cin
                        w = w.at[p, q, s:s + cin, :].set(w_hwio[i, j])
    return w.reshape(4, 4 * cin, cout)


def _fold_fc_weight(w_fc, c2, ho, wo):
    """Rows of w_fc are in torch NCHW-flatten order (c, h, w); permute them to
    the NHWC flatten order (h, w, c) used by the kernels."""
    flat, hid = w_fc.shape
    w = w_fc.reshape(c2, ho, wo, hid).transpose(1, 2, 0, 3)
    return w.reshape(ho * wo * c2, hid)


def init_params(key, in_ch, hidden_size, actions_dim, img_hw):
    c1, c2 = 16, 16                      # logical conv channels (SAC-AE style)
    ho = img_hw // 2                     # spatial size after the stride-2 conv
    flat = c2 * ho * ho                  # torch NCHW flatten size
    ks = jax.random.split(key, 13)
    sc = 0.05

    def nrm(k, shape):
        return sc * jax.random.normal(k, shape, F32)

    logical = {
        "conv1_w": nrm(ks[0], (3, 3, in_ch, c1)).astype(BF16),   # HWIO
        "conv1_b": nrm(ks[1], (c1,)),
        "conv2_w": nrm(ks[2], (3, 3, c1, c2)).astype(BF16),
        "conv2_b": nrm(ks[3], (c2,)),
        "w_fc": nrm(ks[4], (flat, hidden_size)).astype(BF16),    # torch-order rows
        "b_fc": nrm(ks[5], (hidden_size,)),
        "ln_g": jnp.ones((hidden_size,), F32),
        "ln_b": nrm(ks[6], (hidden_size,)),
        "w1": nrm(ks[7], (hidden_size, hidden_size)).astype(BF16),
        "b1": nrm(ks[8], (hidden_size,)),
        "w2": nrm(ks[9], (hidden_size, hidden_size)).astype(BF16),
        "b2": nrm(ks[10], (hidden_size,)),
        "w3": nrm(ks[11], (hidden_size, actions_dim)).astype(BF16),
        "b3": nrm(ks[12], (actions_dim,)),
    }

    params = {
        # conv weights: no 128-lane channel padding any more
        "conv1_w": _fold_stride2_conv_weight(logical["conv1_w"]),  # (4,4Cin,16)
        "conv1_b": logical["conv1_b"].reshape(1, -1),
        "conv2_w": logical["conv2_w"].reshape(9, c1, c2),          # (9,16,16)
        "conv2_b": logical["conv2_b"].reshape(1, -1),
        "w_fc": _fold_fc_weight(logical["w_fc"], c2, ho, ho),      # (1024,32)
        "b_fc": logical["b_fc"].reshape(1, -1),
        "ln_g": logical["ln_g"].reshape(1, -1),
        "ln_b": logical["ln_b"].reshape(1, -1),
        "w1": logical["w1"], "b1": logical["b1"].reshape(1, -1),
        "w2": logical["w2"], "b2": logical["b2"].reshape(1, -1),
        # only the action outputs are padded to 128 lanes (masked in-kernel)
        "w3": _pad_mat(logical["w3"], hidden_size, LANE),
        "b3": _pad_row(logical["b3"], LANE),
    }
    return params, logical


# ---------------------------------------------------------------------------
# Forward pass
# ---------------------------------------------------------------------------
def _space_to_depth_nchw(x):
    # (B, C, H, W) NCHW -> (B, H/2, W/2, 4*C) NHWC blocks; slot = (dy*2+dx)*C+c
    B, C, H, W = x.shape
    x = x.reshape(B, C, H // 2, 2, W // 2, 2)
    x = x.transpose(0, 2, 4, 3, 5, 1)
    return x.reshape(B, H // 2, W // 2, 4 * C)


def actor_forward(x, params, key, *, actions_dim, detach=False,
                  deterministic=False):
    B = x.shape[0]
    # Stride-2 conv1 == 2x2 stride-1 conv on the space-to-depth input (layout
    # folded into the weights at init).  One-time, tiny XLA prep of the input.
    xb = _space_to_depth_nchw(x)
    xb = jnp.pad(xb, ((0, 0), (1, 0), (1, 0), (0, 0)))           # (B,9,9,4C)
    h = conv_stack(xb, params)                                   # (B,8,8,16) bf16
    feat = h.reshape(B, -1)                                      # free NHWC flatten
    if detach:
        # TODO(synk): training through the kernels would need a custom_vjp.
        feat = jax.lax.stop_gradient(feat)
    logp_p, probs_p = actor_head(feat, params, actions_dim)
    logp = logp_p[:, :actions_dim]
    probs = probs_p[:, :actions_dim]
    if deterministic:
        return jnp.argmax(logp, axis=1)            # == argmax(logits)
    action = jax.random.categorical(key, logp, axis=1)
    return action, logp, probs


# ---------------------------------------------------------------------------
# Pure-JAX reference (mirrors the kernels' bf16 quantisation points)
# ---------------------------------------------------------------------------
def _reference_logits(x, logical):
    def conv(xin, w, b, stride):
        B, H, W, _ = xin.shape
        kh, kw, _, co = w.shape
        xp = jnp.pad(xin, ((0, 0), (1, 1), (1, 1), (0, 0)))
        Ho = (H + 2 - kh) // stride + 1
        Wo = (W + 2 - kw) // stride + 1
        acc = jnp.zeros((B, Ho, Wo, co), F32)
        for i in range(kh):
            for j in range(kw):
                patch = xp[:, i:i + stride * Ho:stride, j:j + stride * Wo:stride, :]
                acc = acc + jnp.tensordot(patch.astype(BF16).astype(F32),
                                          w[i, j].astype(F32), axes=((3,), (0,)))
        return jnp.maximum(acc + b, 0.0)

    xh = jnp.transpose(x, (0, 2, 3, 1))
    h = conv(xh, logical["conv1_w"], logical["conv1_b"], 2)
    h = conv(h, logical["conv2_w"], logical["conv2_b"], 1)
    feat = jnp.transpose(h, (0, 3, 1, 2)).reshape(h.shape[0], -1)  # torch flatten
    h = feat.astype(BF16).astype(F32) @ logical["w_fc"].astype(F32) + logical["b_fc"]
    mu = h.mean(-1, keepdims=True)
    var = ((h - mu) ** 2).mean(-1, keepdims=True)
    h = jnp.tanh((h - mu) * jax.lax.rsqrt(var + 1e-5) * logical["ln_g"] + logical["ln_b"])
    h = jnp.maximum(h.astype(BF16).astype(F32) @ logical["w1"].astype(F32) + logical["b1"], 0.0)
    h = jnp.maximum(h.astype(BF16).astype(F32) @ logical["w2"].astype(F32) + logical["b2"], 0.0)
    return h.astype(BF16).astype(F32) @ logical["w3"].astype(F32) + logical["b3"]


if __name__ == "__main__":
    B, C, H, W = 2, 4, 16, 16
    hidden_size, actions_dim = 32, 6

    root = jax.random.PRNGKey(0)
    k_x, k_p, k_s = jax.random.split(root, 3)
    x = jax.random.normal(k_x, (B, C, H, W), F32)
    params, logical = init_params(k_p, C, hidden_size, actions_dim, H)

    forward = jax.jit(actor_forward,
                      static_argnames=("actions_dim", "detach", "deterministic"))

    action, log_prob, action_probs = forward(
        x, params, k_s, actions_dim=actions_dim)
    jax.block_until_ready((action, log_prob, action_probs))

    assert action.shape == (B,)
    assert log_prob.shape == (B, actions_dim)
    assert action_probs.shape == (B, actions_dim)
    assert jnp.allclose(action_probs.sum(axis=1), 1.0, atol=1e-5)
    assert jnp.allclose(jnp.exp(log_prob), action_probs, atol=1e-5)

    greedy = forward(x, params, k_s, actions_dim=actions_dim, deterministic=True)
    jax.block_until_ready(greedy)
    assert greedy.shape == (B,)

    # Cross-check against a pure-JAX reference built from the logical
    # (unfolded) parameters.
    ref_logits = _reference_logits(x, logical)
    ref_logp = jax.nn.log_softmax(ref_logits, axis=-1)
    assert jnp.allclose(jnp.exp(log_prob), jnp.exp(ref_logp), atol=5e-3)
    assert jnp.allclose(log_prob, ref_logp, atol=5e-3)

    print("KERNEL_OK")
</pallas_src>

<mosaic_0001>
module attributes {stable_mosaic.version = 11 : i64} {
  func.func @_conv_stack_kernel(%arg0: i32, %arg1: memref<2x9x9x16xf32, #tpu.memory_space<vmem>>, %arg2: memref<4x16x16xbf16, #tpu.memory_space<vmem>>, %arg3: memref<1x16xf32, #tpu.memory_space<vmem>>, %arg4: memref<9x16x16xbf16, #tpu.memory_space<vmem>>, %arg5: memref<1x16xf32, #tpu.memory_space<vmem>>, %arg6: memref<2x8x8x16xbf16, #tpu.memory_space<vmem>>, %arg7: memref<2x10x10x16xf32, #tpu.memory_space<vmem>>) attributes {dimension_semantics = [#tpu.dimension_semantics<parallel>], iteration_bounds = array<i64: 1>, scalar_prefetch = 0 : i64, scratch_operands = 1 : i64, tpu.core_type = #tpu.core_type<tc>, window_params = [{transform_indices = @transform_0, window_bounds = array<i64: 2, 9, 9, 16>}, {pipeline_mode = #tpu.pipeline_mode<synchronous>, transform_indices = @transform_1, window_bounds = array<i64: 4, 16, 16>}, {pipeline_mode = #tpu.pipeline_mode<synchronous>, transform_indices = @transform_2, window_bounds = array<i64: 1, 16>}, {pipeline_mode = #tpu.pipeline_mode<synchronous>, transform_indices = @transform_3, window_bounds = array<i64: 9, 16, 16>}, {pipeline_mode = #tpu.pipeline_mode<synchronous>, transform_indices = @transform_4, window_bounds = array<i64: 1, 16>}, {transform_indices = @transform_5, window_bounds = array<i64: 2, 8, 8, 16>}]} {
    %c0 = arith.constant 0 : index
    %c0_0 = arith.constant 0 : index
    %c0_1 = arith.constant 0 : index
    %c0_2 = arith.constant 0 : index
    %0 = vector.load %arg1[%c0, %c0_0, %c0_1, %c0_2] : memref<2x9x9x16xf32, #tpu.memory_space<vmem>>, vector<2x8x8x16xf32>
    %1 = vector.shape_cast %0 : vector<2x8x8x16xf32> to vector<128x16xf32>
    %2 = arith.truncf %1 : vector<128x16xf32> to vector<128x16xbf16>
    %c0_3 = arith.constant 0 : index
    %c0_4 = arith.constant 0 : index
    %c0_5 = arith.constant 0 : index
    %3 = vector.load %arg2[%c0_3, %c0_4, %c0_5] : memref<4x16x16xbf16, #tpu.memory_space<vmem>>, vector<1x16x16xbf16>
    %4 = vector.shape_cast %3 : vector<1x16x16xbf16> to vector<16x16xbf16>
    %cst = arith.constant dense<0.000000e+00> : vector<128x16xf32>
    %5 = tpu.matmul %2, %4, %cst {dimension_numbers = #tpu.dot_dimension_numbers<[1], [0], [0], [1], [0, 0, 1, 1], [], []>} : vector<128x16xbf16>, vector<16x16xbf16>, vector<128x16xf32> -> vector<128x16xf32>
    %c0_6 = arith.constant 0 : index
    %c0_7 = arith.constant 0 : index
    %c1 = arith.constant 1 : index
    %c0_8 = arith.constant 0 : index
    %6 = vector.load %arg1[%c0_6, %c0_7, %c1, %c0_8] : memref<2x9x9x16xf32, #tpu.memory_space<vmem>>, vector<2x8x8x16xf32>
    %7 = vector.shape_cast %6 : vector<2x8x8x16xf32> to vector<128x16xf32>
    %8 = arith.truncf %7 : vector<128x16xf32> to vector<128x16xbf16>
    %c1_9 = arith.constant 1 : index
    %c0_10 = arith.constant 0 : index
    %c0_11 = arith.constant 0 : index
    %9 = vector.load %arg2[%c1_9, %c0_10, %c0_11] : memref<4x16x16xbf16, #tpu.memory_space<vmem>>, vector<1x16x16xbf16>
    %10 = vector.shape_cast %9 : vector<1x16x16xbf16> to vector<16x16xbf16>
    %cst_12 = arith.constant dense<0.000000e+00> : vector<128x16xf32>
    %11 = tpu.matmul %8, %10, %cst_12 {dimension_numbers = #tpu.dot_dimension_numbers<[1], [0], [0], [1], [0, 0, 1, 1], [], []>} : vector<128x16xbf16>, vector<16x16xbf16>, vector<128x16xf32> -> vector<128x16xf32>
    %12 = arith.addf %5, %11 : vector<128x16xf32>
    %c0_13 = arith.constant 0 : index
    %c1_14 = arith.constant 1 : index
    %c0_15 = arith.constant 0 : index
    %c0_16 = arith.constant 0 : index
    %13 = vector.load %arg1[%c0_13, %c1_14, %c0_15, %c0_16] : memref<2x9x9x16xf32, #tpu.memory_space<vmem>>, vector<2x8x8x16xf32>
    %14 = vector.shape_cast %13 : vector<2x8x8x16xf32> to vector<128x16xf32>
    %15 = arith.truncf %14 : vector<128x16xf32> to vector<128x16xbf16>
    %c2 = arith.constant 2 : index
    %c0_17 = arith.constant 0 : index
    %c0_18 = arith.constant 0 : index
    %16 = vector.load %arg2[%c2, %c0_17, %c0_18] : memref<4x16x16xbf16, #tpu.memory_space<vmem>>, vector<1x16x16xbf16>
    %17 = vector.shape_cast %16 : vector<1x16x16xbf16> to vector<16x16xbf16>
    %cst_19 = arith.constant dense<0.000000e+00> : vector<128x16xf32>
    %18 = tpu.matmul %15, %17, %cst_19 {dimension_numbers = #tpu.dot_dimension_numbers<[1], [0], [0], [1], [0, 0, 1, 1], [], []>} : vector<128x16xbf16>, vector<16x16xbf16>, vector<128x16xf32> -> vector<128x16xf32>
    %19 = arith.addf %12, %18 : vector<128x16xf32>
    %c0_20 = arith.constant 0 : index
    %c1_21 = arith.constant 1 : index
    %c1_22 = arith.constant 1 : index
    %c0_23 = arith.constant 0 : index
    %20 = vector.load %arg1[%c0_20, %c1_21, %c1_22, %c0_23] : memref<2x9x9x16xf32, #tpu.memory_space<vmem>>, vector<2x8x8x16xf32>
    %21 = vector.shape_cast %20 : vector<2x8x8x16xf32> to vector<128x16xf32>
    %22 = arith.truncf %21 : vector<128x16xf32> to vector<128x16xbf16>
    %c3 = arith.constant 3 : index
    %c0_24 = arith.constant 0 : index
    %c0_25 = arith.constant 0 : index
    %23 = vector.load %arg2[%c3, %c0_24, %c0_25] : memref<4x16x16xbf16, #tpu.memory_space<vmem>>, vector<1x16x16xbf16>
    %24 = vector.shape_cast %23 : vector<1x16x16xbf16> to vector<16x16xbf16>
    %cst_26 = arith.constant dense<0.000000e+00> : vector<128x16xf32>
    %25 = tpu.matmul %22, %24, %cst_26 {dimension_numbers = #tpu.dot_dimension_numbers<[1], [0], [0], [1], [0, 0, 1, 1], [], []>} : vector<128x16xbf16>, vector<16x16xbf16>, vector<128x16xf32> -> vector<128x16xf32>
    %26 = arith.addf %19, %25 : vector<128x16xf32>
    %c0_27 = arith.constant 0 : index
    %c0_28 = arith.constant 0 : index
    %27 = vector.load %arg3[%c0_27, %c0_28] : memref<1x16xf32, #tpu.memory_space<vmem>>, vector<1x16xf32>
    %28 = vector.broadcast %27 : vector<1x16xf32> to vector<128x16xf32>
    %29 = arith.addf %26, %28 : vector<128x16xf32>
    %cst_29 = arith.constant 0.000000e+00 : f32
    %30 = vector.broadcast %cst_29 : f32 to vector<128x16xf32>
    %31 = arith.maximumf %29, %30 : vector<128x16xf32>
    %cst_30 = arith.constant 0.000000e+00 : f32
    %32 = vector.broadcast %cst_30 : f32 to vector<2x10x10x16xf32>
    %c0_31 = arith.constant 0 : index
    %c0_32 = arith.constant 0 : index
    %c0_33 = arith.constant 0 : index
    %c0_34 = arith.constant 0 : index
    %33 = vector.load %arg7[%c0_31, %c0_32, %c0_33, %c0_34] : memref<2x10x10x16xf32, #tpu.memory_space<vmem>>, vector<2x10x10x16xf32>
    tpu.vector_store %arg7[%c0_31, %c0_32, %c0_33, %c0_34], %32 {strides = array<i32>} : memref<2x10x10x16xf32, #tpu.memory_space<vmem>>, vector<2x10x10x16xf32>,
    %34 = vector.shape_cast %31 : vector<128x16xf32> to vector<2x8x8x16xf32>
    %c0_35 = arith.constant 0 : index
    %c1_36 = arith.constant 1 : index
    %c1_37 = arith.constant 1 : index
    %c0_38 = arith.constant 0 : index
    %35 = vector.load %arg7[%c0_35, %c1_36, %c1_37, %c0_38] : memref<2x10x10x16xf32, #tpu.memory_space<vmem>>, vector<2x8x8x16xf32>
    tpu.vector_store %arg7[%c0_35, %c1_36, %c1_37, %c0_38], %34 {strides = array<i32>} : memref<2x10x10x16xf32, #tpu.memory_space<vmem>>, vector<2x8x8x16xf32>,
    %c0_39 = arith.constant 0 : index
    %c0_40 = arith.constant 0 : index
    %c0_41 = arith.constant 0 : index
    %c0_42 = arith.constant 0 : index
    %36 = vector.load %arg7[%c0_39, %c0_40, %c0_41, %c0_42] : memref<2x10x10x16xf32, #tpu.memory_space<vmem>>, vector<2x10x8x16xf32>
    %37 = arith.truncf %36 : vector<2x10x8x16xf32> to vector<2x10x8x16xbf16>
    %38 = vector.extract_strided_slice %37 {offsets = [0, 0, 0, 0], sizes = [2, 8, 8, 16], strides = [1, 1, 1, 1]} : vector<2x10x8x16xbf16> to vector<2x8x8x16xbf16>
    %39 = vector.shape_cast %38 : vector<2x8x8x16xbf16> to vector<128x16xbf16>
    %c0_43 = arith.constant 0 : index
    %c0_44 = arith.constant 0 : index
    %c0_45 = arith.constant 0 : index
    %40 = vector.load %arg4[%c0_43, %c0_44, %c0_45] : memref<9x16x16xbf16, #tpu.memory_space<vmem>>, vector<1x16x16xbf16>
    %41 = vector.shape_cast %40 : vector<1x16x16xbf16> to vector<16x16xbf16>
    %cst_46 = arith.constant dense<0.000000e+00> : vector<128x16xf32>
    %42 = tpu.matmul %39, %41, %cst_46 {dimension_numbers = #tpu.dot_dimension_numbers<[1], [0], [0], [1], [0, 0, 1, 1], [], []>} : vector<128x16xbf16>, vector<16x16xbf16>, vector<128x16xf32> -> vector<128x16xf32>
    %43 = vector.extract_strided_slice %37 {offsets = [0, 1, 0, 0], sizes = [2, 8, 8, 16], strides = [1, 1, 1, 1]} : vector<2x10x8x16xbf16> to vector<2x8x8x16xbf16>
    %44 = vector.shape_cast %43 : vector<2x8x8x16xbf16> to vector<128x16xbf16>
    %c3_47 = arith.constant 3 : index
    %c0_48 = arith.constant 0 : index
    %c0_49 = arith.constant 0 : index
    %45 = vector.load %arg4[%c3_47, %c0_48, %c0_49] : memref<9x16x16xbf16, #tpu.memory_space<vmem>>, vector<1x16x16xbf16>
    %46 = vector.shape_cast %45 : vector<1x16x16xbf16> to vector<16x16xbf16>
    %cst_50 = arith.constant dense<0.000000e+00> : vector<128x16xf32>
    %47 = tpu.matmul %44, %46, %cst_50 {dimension_numbers = #tpu.dot_dimension_numbers<[1], [0], [0], [1], [0, 0, 1, 1], [], []>} : vector<128x16xbf16>, vector<16x16xbf16>, vector<128x16xf32> -> vector<128x16xf32>
    %48 = arith.addf %42, %47 : vector<128x16xf32>
    %49 = vector.extract_strided_slice %37 {offsets = [0, 2, 0, 0], sizes = [2, 8, 8, 16], strides = [1, 1, 1, 1]} : vector<2x10x8x16xbf16> to vector<2x8x8x16xbf16>
    %50 = vector.shape_cast %49 : vector<2x8x8x16xbf16> to vector<128x16xbf16>
    %c6 = arith.constant 6 : index
    %c0_51 = arith.constant 0 : index
    %c0_52 = arith.constant 0 : index
    %51 = vector.load %arg4[%c6, %c0_51, %c0_52] : memref<9x16x16xbf16, #tpu.memory_space<vmem>>, vector<1x16x16xbf16>
    %52 = vector.shape_cast %51 : vector<1x16x16xbf16> to vector<16x16xbf16>
    %cst_53 = arith.constant dense<0.000000e+00> : vector<128x16xf32>
    %53 = tpu.matmul %50, %52, %cst_53 {dimension_numbers = #tpu.dot_dimension_numbers<[1], [0], [0], [1], [0, 0, 1, 1], [], []>} : vector<128x16xbf16>, vector<16x16xbf16>, vector<128x16xf32> -> vector<128x16xf32>
    %54 = arith.addf %48, %53 : vector<128x16xf32>
    %c0_54 = arith.constant 0 : index
    %c0_55 = arith.constant 0 : index
    %c1_56 = arith.constant 1 : index
    %c0_57 = arith.constant 0 : index
    %55 = vector.load %arg7[%c0_54, %c0_55, %c1_56, %c0_57] : memref<2x10x10x16xf32, #tpu.memory_space<vmem>>, vector<2x10x8x16xf32>
    %56 = arith.truncf %55 : vector<2x10x8x16xf32> to vector<2x10x8x16xbf16>
    %57 = vector.extract_strided_slice %56 {offsets = [0, 0, 0, 0], sizes = [2, 8, 8, 16], strides = [1, 1, 1, 1]} : vector<2x10x8x16xbf16> to vector<2x8x8x16xbf16>
    %58 = vector.shape_cast %57 : vector<2x8x8x16xbf16> to vector<128x16xbf16>
    %c1_58 = arith.constant 1 : index
    %c0_59 = arith.constant 0 : index
    %c0_60 = arith.constant 0 : index
    %59 = vector.load %arg4[%c1_58, %c0_59, %c0_60] : memref<9x16x16xbf16, #tpu.memory_space<vmem>>, vector<1x16x16xbf16>
    %60 = vector.shape_cast %59 : vector<1x16x16xbf16> to vector<16x16xbf16>
    %cst_61 = arith.constant dense<0.000000e+00> : vector<128x16xf32>
    %61 = tpu.matmul %58, %60, %cst_61 {dimension_numbers = #tpu.dot_dimension_numbers<[1], [0], [0], [1], [0, 0, 1, 1], [], []>} : vector<128x16xbf16>, vector<16x16xbf16>, vector<128x16xf32> -> vector<128x16xf32>
    %62 = arith.addf %54, %61 : vector<128x16xf32>
    %63 = vector.extract_strided_slice %56 {offsets = [0, 1, 0, 0], sizes = [2, 8, 8, 16], strides = [1, 1, 1, 1]} : vector<2x10x8x16xbf16> to vector<2x8x8x16xbf16>
    %64 = vector.shape_cast %63 : vector<2x8x8x16xbf16> to vector<128x16xbf16>
    %c4 = arith.constant 4 : index
    %c0_62 = arith.constant 0 : index
    %c0_63 = arith.constant 0 : index
    %65 = vector.load %arg4[%c4, %c0_62, %c0_63] : memref<9x16x16xbf16, #tpu.memory_space<vmem>>, vector<1x16x16xbf16>
    %66 = vector.shape_cast %65 : vector<1x16x16xbf16> to vector<16x16xbf16>
    %cst_64 = arith.constant dense<0.000000e+00> : vector<128x16xf32>
    %67 = tpu.matmul %64, %66, %cst_64 {dimension_numbers = #tpu.dot_dimension_numbers<[1], [0], [0], [1], [0, 0, 1, 1], [], []>} : vector<128x16xbf16>, vector<16x16xbf16>, vector<128x16xf32> -> vector<128x16xf32>
    %68 = arith.addf %62, %67 : vector<128x16xf32>
    %69 = vector.extract_strided_slice %56 {offsets = [0, 2, 0, 0], sizes = [2, 8, 8, 16], strides = [1, 1, 1, 1]} : vector<2x10x8x16xbf16> to vector<2x8x8x16xbf16>
    %70 = vector.shape_cast %69 : vector<2x8x8x16xbf16> to vector<128x16xbf16>
    %c7 = arith.constant 7 : index
    %c0_65 = arith.constant 0 : index
    %c0_66 = arith.constant 0 : index
    %71 = vector.load %arg4[%c7, %c0_65, %c0_66] : memref<9x16x16xbf16, #tpu.memory_space<vmem>>, vector<1x16x16xbf16>
    %72 = vector.shape_cast %71 : vector<1x16x16xbf16> to vector<16x16xbf16>
    %cst_67 = arith.constant dense<0.000000e+00> : vector<128x16xf32>
    %73 = tpu.matmul %70, %72, %cst_67 {dimension_numbers = #tpu.dot_dimension_numbers<[1], [0], [0], [1], [0, 0, 1, 1], [], []>} : vector<128x16xbf16>, vector<16x16xbf16>, vector<128x16xf32> -> vector<128x16xf32>
    %74 = arith.addf %68, %73 : vector<128x16xf32>
    %c0_68 = arith.constant 0 : index
    %c0_69 = arith.constant 0 : index
    %c2_70 = arith.constant 2 : index
    %c0_71 = arith.constant 0 : index
    %75 = vector.load %arg7[%c0_68, %c0_69, %c2_70, %c0_71] : memref<2x10x10x16xf32, #tpu.memory_space<vmem>>, vector<2x10x8x16xf32>
    %76 = arith.truncf %75 : vector<2x10x8x16xf32> to vector<2x10x8x16xbf16>
    %77 = vector.extract_strided_slice %76 {offsets = [0, 0, 0, 0], sizes = [2, 8, 8, 16], strides = [1, 1, 1, 1]} : vector<2x10x8x16xbf16> to vector<2x8x8x16xbf16>
    %78 = vector.shape_cast %77 : vector<2x8x8x16xbf16> to vector<128x16xbf16>
    %c2_72 = arith.constant 2 : index
    %c0_73 = arith.constant 0 : index
    %c0_74 = arith.constant 0 : index
    %79 = vector.load %arg4[%c2_72, %c0_73, %c0_74] : memref<9x16x16xbf16, #tpu.memory_space<vmem>>, vector<1x16x16xbf16>
    %80 = vector.shape_cast %79 : vector<1x16x16xbf16> to vector<16x16xbf16>
    %cst_75 = arith.constant dense<0.000000e+00> : vector<128x16xf32>
    %81 = tpu.matmul %78, %80, %cst_75 {dimension_numbers = #tpu.dot_dimension_numbers<[1], [0], [0], [1], [0, 0, 1, 1], [], []>} : vector<128x16xbf16>, vector<16x16xbf16>, vector<128x16xf32> -> vector<128x16xf32>
    %82 = arith.addf %74, %81 : vector<128x16xf32>
    %83 = vector.extract_strided_slice %76 {offsets = [0, 1, 0, 0], sizes = [2, 8, 8, 16], strides = [1, 1, 1, 1]} : vector<2x10x8x16xbf16> to vector<2x8x8x16xbf16>
    %84 = vector.shape_cast %83 : vector<2x8x8x16xbf16> to vector<128x16xbf16>
    %c5 = arith.constant 5 : index
    %c0_76 = arith.constant 0 : index
    %c0_77 = arith.constant 0 : index
    %85 = vector.load %arg4[%c5, %c0_76, %c0_77] : memref<9x16x16xbf16, #tpu.memory_space<vmem>>, vector<1x16x16xbf16>
    %86 = vector.shape_cast %85 : vector<1x16x16xbf16> to vector<16x16xbf16>
    %cst_78 = arith.constant dense<0.000000e+00> : vector<128x16xf32>
    %87 = tpu.matmul %84, %86, %cst_78 {dimension_numbers = #tpu.dot_dimension_numbers<[1], [0], [0], [1], [0, 0, 1, 1], [], []>} : vector<128x16xbf16>, vector<16x16xbf16>, vector<128x16xf32> -> vector<128x16xf32>
    %88 = arith.addf %82, %87 : vector<128x16xf32>
    %89 = vector.extract_strided_slice %76 {offsets = [0, 2, 0, 0], sizes = [2, 8, 8, 16], strides = [1, 1, 1, 1]} : vector<2x10x8x16xbf16> to vector<2x8x8x16xbf16>
    %90 = vector.shape_cast %89 : vector<2x8x8x16xbf16> to vector<128x16xbf16>
    %c8 = arith.constant 8 : index
    %c0_79 = arith.constant 0 : index
    %c0_80 = arith.constant 0 : index
    %91 = vector.load %arg4[%c8, %c0_79, %c0_80] : memref<9x16x16xbf16, #tpu.memory_space<vmem>>, vector<1x16x16xbf16>
    %92 = vector.shape_cast %91 : vector<1x16x16xbf16> to vector<16x16xbf16>
    %cst_81 = arith.constant dense<0.000000e+00> : vector<128x16xf32>
    %93 = tpu.matmul %90, %92, %cst_81 {dimension_numbers = #tpu.dot_dimension_numbers<[1], [0], [0], [1], [0, 0, 1, 1], [], []>} : vector<128x16xbf16>, vector<16x16xbf16>, vector<128x16xf32> -> vector<128x16xf32>
    %94 = arith.addf %88, %93 : vector<128x16xf32>
    %c0_82 = arith.constant 0 : index
    %c0_83 = arith.constant 0 : index
    %95 = vector.load %arg5[%c0_82, %c0_83] : memref<1x16xf32, #tpu.memory_space<vmem>>, vector<1x16xf32>
    %96 = vector.broadcast %95 : vector<1x16xf32> to vector<128x16xf32>
    %97 = arith.addf %94, %96 : vector<128x16xf32>
    %cst_84 = arith.constant 0.000000e+00 : f32
    %98 = vector.broadcast %cst_84 : f32 to vector<128x16xf32>
    %99 = arith.maximumf %97, %98 : vector<128x16xf32>
    %100 = vector.shape_cast %99 : vector<128x16xf32> to vector<2x8x8x16xf32>
    %101 = arith.truncf %100 : vector<2x8x8x16xf32> to vector<2x8x8x16xbf16>
    %c0_85 = arith.constant 0 : index
    %c0_86 = arith.constant 0 : index
    %c0_87 = arith.constant 0 : index
    %c0_88 = arith.constant 0 : index
    %102 = vector.load %arg6[%c0_85, %c0_86, %c0_87, %c0_88] : memref<2x8x8x16xbf16, #tpu.memory_space<vmem>>, vector<2x8x8x16xbf16>
    tpu.vector_store %arg6[%c0_85, %c0_86, %c0_87, %c0_88], %101 {strides = array<i32>} : memref<2x8x8x16xbf16, #tpu.memory_space<vmem>>, vector<2x8x8x16xbf16>,
    return
  }
  func.func @transform_0(%arg0: i32) -> (i32, i32, i32, i32) {
    %c0_i32 = arith.constant 0 : i32
    %c0_i32_0 = arith.constant 0 : i32
    %c0_i32_1 = arith.constant 0 : i32
    %c0_i32_2 = arith.constant 0 : i32
    return %arg0, %c0_i32, %c0_i32_0, %c0_i32_1 : i32, i32, i32, i32
  }
  func.func @transform_1(%arg0: i32) -> (i32, i32, i32) {
    %c0_i32 = arith.constant 0 : i32
    %c0_i32_0 = arith.constant 0 : i32
    %c0_i32_1 = arith.constant 0 : i32
    %c0_i32_2 = arith.constant 0 : i32
    return %c0_i32, %c0_i32_0, %c0_i32_1 : i32, i32, i32
  }
  func.func @transform_2(%arg0: i32) -> (i32, i32) {
    %c0_i32 = arith.constant 0 : i32
    %c0_i32_0 = arith.constant 0 : i32
    %c0_i32_1 = arith.constant 0 : i32
    return %c0_i32, %c0_i32_0 : i32, i32
  }
  func.func @transform_3(%arg0: i32) -> (i32, i32, i32) {
    %c0_i32 = arith.constant 0 : i32
    %c0_i32_0 = arith.constant 0 : i32
    %c0_i32_1 = arith.constant 0 : i32
    %c0_i32_2 = arith.constant 0 : i32
    return %c0_i32, %c0_i32_0, %c0_i32_1 : i32, i32, i32
  }
  func.func @transform_4(%arg0: i32) -> (i32, i32) {
    %c0_i32 = arith.constant 0 : i32
    %c0_i32_0 = arith.constant 0 : i32
    %c0_i32_1 = arith.constant 0 : i32
    return %c0_i32, %c0_i32_0 : i32, i32
  }
  func.func @transform_5(%arg0: i32) -> (i32, i32, i32, i32) {
    %c0_i32 = arith.constant 0 : i32
    %c0_i32_0 = arith.constant 0 : i32
    %c0_i32_1 = arith.constant 0 : i32
    %c0_i32_2 = arith.constant 0 : i32
    return %arg0, %c0_i32, %c0_i32_0, %c0_i32_1 : i32, i32, i32, i32
  }
}

module attributes {stable_mosaic.version = 11 : i64} {
  func.func @kernel(%arg0: i32, %arg1: memref<2x1024xbf16, #tpu.memory_space<vmem>>, %arg2: memref<1024x32xbf16, #tpu.memory_space<vmem>>, %arg3: memref<1x32xf32, #tpu.memory_space<vmem>>, %arg4: memref<1x32xf32, #tpu.memory_space<vmem>>, %arg5: memref<1x32xf32, #tpu.memory_space<vmem>>, %arg6: memref<32x32xbf16, #tpu.memory_space<vmem>>, %arg7: memref<1x32xf32, #tpu.memory_space<vmem>>, %arg8: memref<32x32xbf16, #tpu.memory_space<vmem>>, %arg9: memref<1x32xf32, #tpu.memory_space<vmem>>, %arg10: memref<32x128xbf16, #tpu.memory_space<vmem>>, %arg11: memref<1x128xf32, #tpu.memory_space<vmem>>, %arg12: memref<2x128xf32, #tpu.memory_space<vmem>>, %arg13: memref<2x128xf32, #tpu.memory_space<vmem>>) attributes {dimension_semantics = [#tpu.dimension_semantics<parallel>], iteration_bounds = array<i64: 1>, scalar_prefetch = 0 : i64, scratch_operands = 0 : i64, tpu.core_type = #tpu.core_type<tc>, window_params = [{transform_indices = @transform_0, window_bounds = array<i64: 2, 1024>}, {pipeline_mode = #tpu.pipeline_mode<synchronous>, transform_indices = @transform_1, window_bounds = array<i64: 1024, 32>}, {pipeline_mode = #tpu.pipeline_mode<synchronous>, transform_indices = @transform_2, window_bounds = array<i64: 1, 32>}, {pipeline_mode = #tpu.pipeline_mode<synchronous>, transform_indices = @transform_3, window_bounds = array<i64: 1, 32>}, {pipeline_mode = #tpu.pipeline_mode<synchronous>, transform_indices = @transform_4, window_bounds = array<i64: 1, 32>}, {pipeline_mode = #tpu.pipeline_mode<synchronous>, transform_indices = @transform_5, window_bounds = array<i64: 32, 32>}, {pipeline_mode = #tpu.pipeline_mode<synchronous>, transform_indices = @transform_6, window_bounds = array<i64: 1, 32>}, {pipeline_mode = #tpu.pipeline_mode<synchronous>, transform_indices = @transform_7, window_bounds = array<i64: 32, 32>}, {pipeline_mode = #tpu.pipeline_mode<synchronous>, transform_indices = @transform_8, window_bounds = array<i64: 1, 32>}, {pipeline_mode = #tpu.pipeline_mode<synchronous>, transform_indices = @transform_9, window_bounds = array<i64: 32, 128>}, {pipeline_mode = #tpu.pipeline_mode<synchronous>, transform_indices = @transform_10, window_bounds = array<i64: 1, 128>}, {transform_indices = @transform_11, window_bounds = array<i64: 2, 128>}, {transform_indices = @transform_12, window_bounds = array<i64: 2, 128>}]} {
    %c0 = arith.constant 0 : index
    %c0_0 = arith.constant 0 : index
    %0 = vector.load %arg1[%c0, %c0_0] : memref<2x1024xbf16, #tpu.memory_space<vmem>>, vector<2x1024xbf16>
    %c0_1 = arith.constant 0 : index
    %c0_2 = arith.constant 0 : index
    %1 = vector.load %arg2[%c0_1, %c0_2] : memref<1024x32xbf16, #tpu.memory_space<vmem>>, vector<1024x32xbf16>
    %cst = arith.constant dense<0.000000e+00> : vector<2x32xf32>
    %2 = tpu.matmul %0, %1, %cst {dimension_numbers = #tpu.dot_dimension_numbers<[1], [0], [0], [1], [0, 0, 1, 1], [], []>} : vector<2x1024xbf16>, vector<1024x32xbf16>, vector<2x32xf32> -> vector<2x32xf32>
    %c0_3 = arith.constant 0 : index
    %c0_4 = arith.constant 0 : index
    %3 = vector.load %arg3[%c0_3, %c0_4] : memref<1x32xf32, #tpu.memory_space<vmem>>, vector<1x32xf32>
    %4 = vector.broadcast %3 : vector<1x32xf32> to vector<2x32xf32>
    %5 = arith.addf %2, %4 : vector<2x32xf32>
    %cst_5 = arith.constant dense<0.000000e+00> : vector<2xf32>
    %6 = vector.multi_reduction <add>, %5, %cst_5 [1] : vector<2x32xf32> to vector<2xf32>
    %7 = vector.shape_cast %6 : vector<2xf32> to vector<2x1xf32>
    %cst_6 = arith.constant 3.200000e+01 : f32
    %8 = vector.broadcast %cst_6 : f32 to vector<2x1xf32>
    %9 = arith.divf %7, %8 : vector<2x1xf32>
    %10 = vector.broadcast %9 : vector<2x1xf32> to vector<2x32xf32>
    %11 = arith.subf %5, %10 : vector<2x32xf32>
    %12 = arith.mulf %11, %11 : vector<2x32xf32>
    %cst_7 = arith.constant dense<0.000000e+00> : vector<2xf32>
    %13 = vector.multi_reduction <add>, %12, %cst_7 [1] : vector<2x32xf32> to vector<2xf32>
    %14 = vector.shape_cast %13 : vector<2xf32> to vector<2x1xf32>
    %cst_8 = arith.constant 3.200000e+01 : f32
    %15 = vector.broadcast %cst_8 : f32 to vector<2x1xf32>
    %16 = arith.divf %14, %15 : vector<2x1xf32>
    %cst_9 = arith.constant 9.99999974E-6 : f32
    %17 = vector.broadcast %cst_9 : f32 to vector<2x1xf32>
    %18 = arith.addf %16, %17 : vector<2x1xf32>
    %19 = math.rsqrt %18 : vector<2x1xf32>
    %20 = vector.broadcast %19 : vector<2x1xf32> to vector<2x32xf32>
    %21 = arith.mulf %11, %20 : vector<2x32xf32>
    %c0_10 = arith.constant 0 : index
    %c0_11 = arith.constant 0 : index
    %22 = vector.load %arg4[%c0_10, %c0_11] : memref<1x32xf32, #tpu.memory_space<vmem>>, vector<1x32xf32>
    %23 = vector.broadcast %22 : vector<1x32xf32> to vector<2x32xf32>
    %24 = arith.mulf %21, %23 : vector<2x32xf32>
    %c0_12 = arith.constant 0 : index
    %c0_13 = arith.constant 0 : index
    %25 = vector.load %arg5[%c0_12, %c0_13] : memref<1x32xf32, #tpu.memory_space<vmem>>, vector<1x32xf32>
    %26 = vector.broadcast %25 : vector<1x32xf32> to vector<2x32xf32>
    %27 = arith.addf %24, %26 : vector<2x32xf32>
    %28 = math.tanh %27 : vector<2x32xf32>
    %29 = arith.truncf %28 : vector<2x32xf32> to vector<2x32xbf16>
    %c0_14 = arith.constant 0 : index
    %c0_15 = arith.constant 0 : index
    %30 = vector.load %arg6[%c0_14, %c0_15] : memref<32x32xbf16, #tpu.memory_space<vmem>>, vector<32x32xbf16>
    %cst_16 = arith.constant dense<0.000000e+00> : vector<2x32xf32>
    %31 = tpu.matmul %29, %30, %cst_16 {dimension_numbers = #tpu.dot_dimension_numbers<[1], [0], [0], [1], [0, 0, 1, 1], [], []>} : vector<2x32xbf16>, vector<32x32xbf16>, vector<2x32xf32> -> vector<2x32xf32>
    %c0_17 = arith.constant 0 : index
    %c0_18 = arith.constant 0 : index
    %32 = vector.load %arg7[%c0_17, %c0_18] : memref<1x32xf32, #tpu.memory_space<vmem>>, vector<1x32xf32>
    %33 = vector.broadcast %32 : vector<1x32xf32> to vector<2x32xf32>
    %34 = arith.addf %31, %33 : vector<2x32xf32>
    %cst_19 = arith.constant 0.000000e+00 : f32
    %35 = vector.broadcast %cst_19 : f32 to vector<2x32xf32>
    %36 = arith.maximumf %34, %35 : vector<2x32xf32>
    %37 = arith.truncf %36 : vector<2x32xf32> to vector<2x32xbf16>
    %c0_20 = arith.constant 0 : index
    %c0_21 = arith.constant 0 : index
    %38 = vector.load %arg8[%c0_20, %c0_21] : memref<32x32xbf16, #tpu.memory_space<vmem>>, vector<32x32xbf16>
    %cst_22 = arith.constant dense<0.000000e+00> : vector<2x32xf32>
    %39 = tpu.matmul %37, %38, %cst_22 {dimension_numbers = #tpu.dot_dimension_numbers<[1], [0], [0], [1], [0, 0, 1, 1], [], []>} : vector<2x32xbf16>, vector<32x32xbf16>, vector<2x32xf32> -> vector<2x32xf32>
    %c0_23 = arith.constant 0 : index
    %c0_24 = arith.constant 0 : index
    %40 = vector.load %arg9[%c0_23, %c0_24] : memref<1x32xf32, #tpu.memory_space<vmem>>, vector<1x32xf32>
    %41 = vector.broadcast %40 : vector<1x32xf32> to vector<2x32xf32>
    %42 = arith.addf %39, %41 : vector<2x32xf32>
    %cst_25 = arith.constant 0.000000e+00 : f32
    %43 = vector.broadcast %cst_25 : f32 to vector<2x32xf32>
    %44 = arith.maximumf %42, %43 : vector<2x32xf32>
    %45 = arith.truncf %44 : vector<2x32xf32> to vector<2x32xbf16>
    %c0_26 = arith.constant 0 : index
    %c0_27 = arith.constant 0 : index
    %46 = vector.load %arg10[%c0_26, %c0_27] : memref<32x128xbf16, #tpu.memory_space<vmem>>, vector<32x128xbf16>
    %cst_28 = arith.constant dense<0.000000e+00> : vector<2x128xf32>
    %47 = tpu.matmul %45, %46, %cst_28 {dimension_numbers = #tpu.dot_dimension_numbers<[1], [0], [0], [1], [0, 0, 1, 1], [], []>} : vector<2x32xbf16>, vector<32x128xbf16>, vector<2x128xf32> -> vector<2x128xf32>
    %c0_29 = arith.constant 0 : index
    %c0_30 = arith.constant 0 : index
    %48 = vector.load %arg11[%c0_29, %c0_30] : memref<1x128xf32, #tpu.memory_space<vmem>>, vector<1x128xf32>
    %49 = vector.broadcast %48 : vector<1x128xf32> to vector<2x128xf32>
    %50 = arith.addf %47, %49 : vector<2x128xf32>
    %51 = tpu.iota {dimensions = array<i32: 1>} : vector<2x128xi32>
    %c6_i32 = arith.constant 6 : i32
    %52 = vector.broadcast %c6_i32 : i32 to vector<2x128xi32>
    %53 = arith.cmpi slt, %51, %52 : vector<2x128xi32>
    %cst_31 = arith.constant -1.000000e+30 : f32
    %54 = vector.broadcast %cst_31 : f32 to vector<2x128xf32>
    %55 = arith.select %53, %50, %54 : vector<2x128xi1>, vector<2x128xf32>
    %cst_32 = arith.constant dense<0xFF800000> : vector<2xf32>
    %56 = vector.multi_reduction <maximumf>, %55, %cst_32 [1] : vector<2x128xf32> to vector<2xf32>
    %57 = vector.shape_cast %56 : vector<2xf32> to vector<2x1xf32>
    %58 = vector.broadcast %57 : vector<2x1xf32> to vector<2x128xf32>
    %59 = arith.subf %55, %58 : vector<2x128xf32>
    %60 = math.exp %59 : vector<2x128xf32>
    %cst_33 = arith.constant dense<0.000000e+00> : vector<2xf32>
    %61 = vector.multi_reduction <add>, %60, %cst_33 [1] : vector<2x128xf32> to vector<2xf32>
    %62 = vector.shape_cast %61 : vector<2xf32> to vector<2x1xf32>
    %63 = math.log %62 : vector<2x1xf32>
    %64 = vector.broadcast %63 : vector<2x1xf32> to vector<2x128xf32>
    %65 = arith.subf %59, %64 : vector<2x128xf32>
    %c0_34 = arith.constant 0 : index
    %c0_35 = arith.constant 0 : index
    %66 = vector.load %arg12[%c0_34, %c0_35] : memref<2x128xf32, #tpu.memory_space<vmem>>, vector<2x128xf32>
    tpu.vector_store %arg12[%c0_34, %c0_35], %65 {strides = array<i32>} : memref<2x128xf32, #tpu.memory_space<vmem>>, vector<2x128xf32>,
    %67 = math.exp %65 : vector<2x128xf32>
    %c0_36 = arith.constant 0 : index
    %c0_37 = arith.constant 0 : index
    %68 = vector.load %arg13[%c0_36, %c0_37] : memref<2x128xf32, #tpu.memory_space<vmem>>, vector<2x128xf32>
    tpu.vector_store %arg13[%c0_36, %c0_37], %67 {strides = array<i32>} : memref<2x128xf32, #tpu.memory_space<vmem>>, vector<2x128xf32>,
    return
  }
  func.func @transform_0(%arg0: i32) -> (i32, i32) {
    %c0_i32 = arith.constant 0 : i32
    %c0_i32_0 = arith.constant 0 : i32
    return %arg0, %c0_i32 : i32, i32
  }
  func.func @transform_1(%arg0: i32) -> (i32, i32) {
    %c0_i32 = arith.constant 0 : i32
    %c0_i32_0 = arith.constant 0 : i32
    %c0_i32_1 = arith.constant 0 : i32
    return %c0_i32, %c0_i32_0 : i32, i32
  }
  func.func @transform_2(%arg0: i32) -> (i32, i32) {
    %c0_i32 = arith.constant 0 : i32
    %c0_i32_0 = arith.constant 0 : i32
    %c0_i32_1 = arith.constant 0 : i32
    return %c0_i32, %c0_i32_0 : i32, i32
  }
  func.func @transform_3(%arg0: i32) -> (i32, i32) {
    %c0_i32 = arith.constant 0 : i32
    %c0_i32_0 = arith.constant 0 : i32
    %c0_i32_1 = arith.constant 0 : i32
    return %c0_i32, %c0_i32_0 : i32, i32
  }
  func.func @transform_4(%arg0: i32) -> (i32, i32) {
    %c0_i32 = arith.constant 0 : i32
    %c0_i32_0 = arith.constant 0 : i32
    %c0_i32_1 = arith.constant 0 : i32
    return %c0_i32, %c0_i32_0 : i32, i32
  }
  func.func @transform_5(%arg0: i32) -> (i32, i32) {
    %c0_i32 = arith.constant 0 : i32
    %c0_i32_0 = arith.constant 0 : i32
    %c0_i32_1 = arith.constant 0 : i32
    return %c0_i32, %c0_i32_0 : i32, i32
  }
  func.func @transform_6(%arg0: i32) -> (i32, i32) {
    %c0_i32 = arith.constant 0 : i32
    %c0_i32_0 = arith.constant 0 : i32
    %c0_i32_1 = arith.constant 0 : i32
    return %c0_i32, %c0_i32_0 : i32, i32
  }
  func.func @transform_7(%arg0: i32) -> (i32, i32) {
    %c0_i32 = arith.constant 0 : i32
    %c0_i32_0 = arith.constant 0 : i32
    %c0_i32_1 = arith.constant 0 : i32
    return %c0_i32, %c0_i32_0 : i32, i32
  }
  func.func @transform_8(%arg0: i32) -> (i32, i32) {
    %c0_i32 = arith.constant 0 : i32
    %c0_i32_0 = arith.constant 0 : i32
    %c0_i32_1 = arith.constant 0 : i32
    return %c0_i32, %c0_i32_0 : i32, i32
  }
  func.func @transform_9(%arg0: i32) -> (i32, i32) {
    %c0_i32 = arith.constant 0 : i32
    %c0_i32_0 = arith.constant 0 : i32
    %c0_i32_1 = arith.constant 0 : i32
    return %c0_i32, %c0_i32_0 : i32, i32
  }
  func.func @transform_10(%arg0: i32) -> (i32, i32) {
    %c0_i32 = arith.constant 0 : i32
    %c0_i32_0 = arith.constant 0 : i32
    %c0_i32_1 = arith.constant 0 : i32
    return %c0_i32, %c0_i32_0 : i32, i32
  }
  func.func @transform_11(%arg0: i32) -> (i32, i32) {
    %c0_i32 = arith.constant 0 : i32
    %c0_i32_0 = arith.constant 0 : i32
    return %arg0, %c0_i32 : i32, i32
  }
  func.func @transform_12(%arg0: i32) -> (i32, i32) {
    %c0_i32 = arith.constant 0 : i32
    %c0_i32_0 = arith.constant 0 : i32
    return %arg0, %c0_i32 : i32, i32
  }
}

</mosaic_0001>

<bundles_post_ra>
// kernel: actor_forward.3
= control target key start
LH: loop header
LB: loop body
LE: loop exit
PB: predicated region body
PF: predicated region fallthrough
CT: control target
= control target key end

     0   :  { %s1585_s0 = inlined_call_operand.vmem [shape: bf16[2,1024], index: 0, kind: input, shape index: {}]   ;;  %s1586_s1 = inlined_call_operand.vmem [shape: bf16[1024,32], index: 1, kind: input, shape index: {}]   ;;  %s1587_s2 = inlined_call_operand.vmem [shape: f32[1,32], index: 2, kind: input, shape index: {}]   ;;  %s1588_s3 = inlined_call_operand.vmem [shape: f32[1,32], index: 3, kind: input, shape index: {}]   ;;  %s1589_s4 = inlined_call_operand.vmem [shape: f32[1,32], index: 4, kind: input, shape index: {}]   ;;  %s1590_s5 = inlined_call_operand.vmem [shape: bf16[32,32], index: 5, kind: input, shape index: {}]   ;;  %s1591_s6 = inlined_call_operand.vmem [shape: f32[1,32], index: 6, kind: input, shape index: {}]   ;;  %s1592_s7 = inlined_call_operand.vmem [shape: bf16[32,32], index: 7, kind: input, shape index: {}]   ;;  %s1593_s8 = inlined_call_operand.vmem [shape: f32[1,32], index: 8, kind: input, shape index: {}]   ;;  %s1594_s9 = inlined_call_operand.vmem [shape: bf16[32,128], index: 9, kind: input, shape index: {}]   ;;  %s1595_s10 = inlined_call_operand.vmem [shape: f32[1,128], index: 10, kind: input, shape index: {}]   ;;  %s1596_s11 = inlined_call_operand.vmem [shape: f32[2,128], index: 11, kind: output, shape index: {0}]   ;;  %s1597_s12 = inlined_call_operand.hbm [shape: f32[2,128], index: 12, kind: output, shape index: {1}]  }
   0x1   :  { %v1167_v0 = vld [vmem:[%s1586_s1 + $0x38] sm:$0xff]  ;;  %v1166_v4 = vld [vmem:[%s1586_s1 + $0x30] sm:$0xff]  ;;  %v1165_v8 = vld [vmem:[%s1586_s1 + $0x28] sm:$0xff] }
   0x2   :  { %v1175_v1 = vld [vmem:[%s1586_s1 + $0x78] sm:$0xff]  ;;  %577 = vmatpush.bf16.msra.mxu0 %v1167_v0  ;;  %v1174_v5 = vld [vmem:[%s1586_s1 + $0x70] sm:$0xff]  ;;  %v1173_v9 = vld [vmem:[%s1586_s1 + $0x68] sm:$0xff] }
   0x3   :  { %v1183_v2 = vld [vmem:[%s1586_s1 + $0xb8] sm:$0xff]  ;;  %590 = vmatpush.bf16.msra.mxu1 %v1175_v1  ;;  %v1182_v6 = vld [vmem:[%s1586_s1 + $0xb0] sm:$0xff]  ;;  %v1181_v10 = vld [vmem:[%s1586_s1 + $0xa8] sm:$0xff] }
   0x4   :  { %v1191_v3 = vld [vmem:[%s1586_s1 + $0xf8] sm:$0xff]  ;;  %603 = vmatpush.bf16.msra.mxu2 %v1183_v2  ;;  %v1190_v7 = vld [vmem:[%s1586_s1 + $0xf0] sm:$0xff]  ;;  %v1189_v11 = vld [vmem:[%s1586_s1 + $0xe8] sm:$0xff] }
   0x5   :  { %616 = vmatpush.bf16.msra.mxu3 %v1191_v3  ;;  %v1164_v12 = vld [vmem:[%s1586_s1 + $0x20] sm:$0xff]  ;;  %v1163_v17 = vld [vmem:[%s1586_s1 + $0x18] sm:$0xff]  ;;  %v1162_v21 = vld [vmem:[%s1586_s1 + $0x10] sm:$0xff] }
   0x6   :  { %578 = vmatpush.bf16.msra.mxu0 %v1166_v4  ;;  %v1172_v13 = vld [vmem:[%s1586_s1 + $0x60] sm:$0xff]  ;;  %v1171_v18 = vld [vmem:[%s1586_s1 + $0x58] sm:$0xff]  ;;  %v1170_v22 = vld [vmem:[%s1586_s1 + $0x50] sm:$0xff] }
   0x7   :  { %591 = vmatpush.bf16.msra.mxu1 %v1174_v5  ;;  %v1180_v14 = vld [vmem:[%s1586_s1 + $0xa0] sm:$0xff]  ;;  %v1179_v19 = vld [vmem:[%s1586_s1 + $0x98] sm:$0xff]  ;;  %v1178_v23 = vld [vmem:[%s1586_s1 + $0x90] sm:$0xff] }
   0x8   :  { %604 = vmatpush.bf16.msra.mxu2 %v1182_v6  ;;  %v1188_v15 = vld [vmem:[%s1586_s1 + $0xe0] sm:$0xff]  ;;  %v1187_v20 = vld [vmem:[%s1586_s1 + $0xd8] sm:$0xff]  ;;  %v1186_v24 = vld [vmem:[%s1586_s1 + $0xd0] sm:$0xff] }
   0x9   :  { %617 = vmatpush.bf16.msra.mxu3 %v1190_v7  ;;  %v42_v16 = vld [vmem:[%s1585_s0] sm:$0xff]  ;;  %v1161_v25 = vld [vmem:[%s1586_s1 + $0x8] sm:$0xff] }
   0xa   :  { %579 = vmatpush.bf16.msra.mxu0 %v1165_v8  ;;  %176 = vst [vmem:[#allocation1] ss:$9 sm:$0xff] %v42_v16  ;;  %v1169_v26 = vld [vmem:[%s1586_s1 + $0x48] sm:$0xff] }
   0xb   :  { %592 = vmatpush.bf16.msra.mxu1 %v1173_v9 }
   0xc   :  { %605 = vmatpush.bf16.msra.mxu2 %v1181_v10 }
   0xd   :  { %618 = vmatpush.bf16.msra.mxu3 %v1189_v11 }
   0xe   :  { %580 = vmatpush.bf16.msra.mxu0 %v1164_v12 }
   0xf   :  { %593 = vmatpush.bf16.msra.mxu1 %v1172_v13 }
  0x10   :  { %606 = vmatpush.bf16.msra.mxu2 %v1180_v14 }
  0x11   :  { %619 = vmatpush.bf16.msra.mxu3 %v1188_v15 }
  0x12   :  { %581 = vmatpush.bf16.msra.mxu0 %v1163_v17 }
  0x13   :  { %594 = vmatpush.bf16.msra.mxu1 %v1171_v18 }
  0x14   :  { %607 = vmatpush.bf16.msra.mxu2 %v1179_v19 }
  0x15   :  { %620 = vmatpush.bf16.msra.mxu3 %v1187_v20 }
  0x16   :  { %582 = vmatpush.bf16.msra.mxu0 %v1162_v21 }
  0x17   :  { %595 = vmatpush.bf16.msra.mxu1 %v1170_v22 }
  0x18   :  { %18 = vsyncpa [#allocation3], 0  ;;  %608 = vmatpush.bf16.msra.mxu2 %v1178_v23  ;;  %v1177_v27 = vld [vmem:[%s1586_s1 + $0x88] sm:$0xff]  ;;  %v1160_v29 = vld [vmem:[%s1586_s1] sm:$0xff]  ;;  %vm681_vm0 = vcmask 254976   ;;  %vm743_vm5 = vcmask 261120  }
  0x19   :  { %621 = vmatpush.bf16.msra.mxu3 %v1186_v24  ;;  %v1185_v28 = vld [vmem:[%s1586_s1 + $0xc8] sm:$0xff]  ;;  %v1168_v30 = vld [vmem:[%s1586_s1 + $0x40] sm:$0xff]  ;;  %v1199_v33 = vld [vmem:[%s1586_s1 + $0x138] sm:$0xff]  ;;  %vm840_vm7 = vcmask 1041408   ;;  %s1277_s17 = smov [#allocation2]  }
  0x1a   :  { %583 = vmatpush.bf16.msra.mxu0 %v1161_v25  ;;  %v1176_v31 = vld [vmem:[%s1586_s1 + $0x80] sm:$0xff]  ;;  %v1207_v34 = vld [vmem:[%s1586_s1 + $0x178] sm:$0xff]  ;;  %v1198_v37 = vld [vmem:[%s1586_s1 + $0x130] sm:$0xff]  ;;  %s864_s18 = sshll.u32 %s1277_s17, 4  ;;  %s865_s18 = int_to_ptr.vmem [resolvable:$true] %s864_s18 }
  0x1b   :  { %596 = vmatpush.bf16.msra.mxu1 %v1169_v26  ;;  %v1184_v32 = vld [vmem:[%s1586_s1 + $0xc0] sm:$0xff]  ;;  %v1215_v35 = vld [vmem:[%s1586_s1 + $0x1b8] sm:$0xff]  ;;  %v1206_v40 = vld [vmem:[%s1586_s1 + $0x170] sm:$0xff] }
  0x1c   :  { %609 = vmatpush.bf16.msra.mxu2 %v1177_v27  ;;  %v1223_v36 = vld [vmem:[%s1586_s1 + $0x1f8] sm:$0xff]  ;;  %v177_v39 = vld [vmem:[#allocation1] sm:$0xff]  ;;  %v178_v42 = vld [vmem:[#allocation1 + $0x9] sm:$0xff] }
  0x1d   :  { %622 = vmatpush.bf16.msra.mxu3 %v1185_v28  ;;  %v179_v38 = vld [vmem:[#allocation1 + $0x12] sm:$0xff]  ;;  %v180_v41 = vld [vmem:[#allocation1 + $0x1b] sm:$0xff]  ;;  %v1197_v45 = vld [vmem:[%s1586_s1 + $0x128] sm:$0xff] }
  0x1e   :  { %584 = vmatpush.bf16.msra.mxu0 %v1160_v29  ;;  %v1214_v43 = vld [vmem:[%s1586_s1 + $0x1b0] sm:$0xff]  ;;  %v1205_v46 = vld [vmem:[%s1586_s1 + $0x168] sm:$0xff]  ;;  %v1196_v49 = vld [vmem:[%s1586_s1 + $0x120] sm:$0xff] }
  0x1f   :  { %597 = vmatpush.bf16.msra.mxu1 %v1168_v30  ;;  %v1222_v44 = vld [vmem:[%s1586_s1 + $0x1f0] sm:$0xff]  ;;  %v1213_v47 = vld [vmem:[%s1586_s1 + $0x1a8] sm:$0xff]  ;;  %v1204_v50 = vld [vmem:[%s1586_s1 + $0x160] sm:$0xff] }
  0x20   :  { %610 = vmatpush.bf16.msra.mxu2 %v1176_v31  ;;  %v1221_v48 = vld [vmem:[%s1586_s1 + $0x1e8] sm:$0xff]  ;;  %v1212_v51 = vld [vmem:[%s1586_s1 + $0x1a0] sm:$0xff]  ;;  %v1195_v53 = vld [vmem:[%s1586_s1 + $0x118] sm:$0xff] }
  0x21   :  { %623 = vmatpush.bf16.msra.mxu3 %v1184_v32  ;;  %585 = vmatmul.bf16.vlgmr.msra.gmra.mxu0 %v177_v39  ;;  %v1220_v52 = vld [vmem:[%s1586_s1 + $0x1e0] sm:$0xff]  ;;  %v1203_v54 = vld [vmem:[%s1586_s1 + $0x158] sm:$0xff]  ;;  %v1194_v57 = vld [vmem:[%s1586_s1 + $0x110] sm:$0xff] }
  0x22   :  { %629 = vmatpush.bf16.msrb.mxu0 %v1199_v33  ;;  %598 = vmatmul.bf16.vlgmr.msra.gmra.mxu1 %v178_v42  ;;  %v1211_v55 = vld [vmem:[%s1586_s1 + $0x198] sm:$0xff]  ;;  %v1202_v58 = vld [vmem:[%s1586_s1 + $0x150] sm:$0xff]  ;;  %v1193_v61 = vld [vmem:[%s1586_s1 + $0x108] sm:$0xff] }
  0x23   :  { %642 = vmatpush.bf16.msrb.mxu1 %v1207_v34  ;;  %611 = vmatmul.bf16.vlgmr.msra.gmra.mxu2 %v179_v38  ;;  %v1219_v56 = vld [vmem:[%s1586_s1 + $0x1d8] sm:$0xff]  ;;  %v1210_v59 = vld [vmem:[%s1586_s1 + $0x190] sm:$0xff]  ;;  %v1201_v62 = vld [vmem:[%s1586_s1 + $0x148] sm:$0xff] }
  0x24   :  { %655 = vmatpush.bf16.msrb.mxu2 %v1215_v35  ;;  %624 = vmatmul.bf16.vlgmr.msra.gmra.mxu3 %v180_v41  ;;  %v1218_v60 = vld [vmem:[%s1586_s1 + $0x1d0] sm:$0xff]  ;;  %v1209_v63 = vld [vmem:[%s1586_s1 + $0x188] sm:$0xff]  ;;  %v1192_v1 = vld [vmem:[%s1586_s1 + $0x100] sm:$0xff]  ;;  %v1276_v35 = vmov 32.0  }
  0x25   :  { %668 = vmatpush.bf16.msrb.mxu3 %v1223_v36  ;;  %v1217_v0 = vld [vmem:[%s1586_s1 + $0x1c8] sm:$0xff]  ;;  %v1200_v2 = vld [vmem:[%s1586_s1 + $0x140] sm:$0xff]  ;;  %v183_v7 = vld [vmem:[#allocation1 + $0x36] sm:$0xff]  ;;  %1238 = vrcp.f32 %v1276_v35 }
  0x26   :  { %630 = vmatpush.bf16.msrb.mxu0 %v1198_v37  ;;  %v1208_v3 = vld [vmem:[%s1586_s1 + $0x180] sm:$0xff]  ;;  %v182_v6 = vld [vmem:[#allocation1 + $0x2d] sm:$0xff] }
  0x27   :  { %643 = vmatpush.bf16.msrb.mxu1 %v1206_v40  ;;  %v1216_v4 = vld [vmem:[%s1586_s1 + $0x1c0] sm:$0xff]  ;;  %s866_s1 = sshll.u32 %s1597_s12, 4  ;;  %s867_s1 = int_to_ptr.hbm [resolvable:$true] %s866_s1 }
  0x28   :  { %656 = vmatpush.bf16.msrb.mxu2 %v1214_v43  ;;  %v181_v5 = vld [vmem:[#allocation1 + $0x24] sm:$0xff]  ;;  %v1232_v15 = vld [vmem:[%s1587_s2] ss:$0 sm:$0xff] }
  0x29   :  { %669 = vmatpush.bf16.msrb.mxu3 %v1222_v44  ;;  %v184_v8 = vld [vmem:[#allocation1 + $0x3f] sm:$0xff] }
  0x2a   :  { %631 = vmatpush.bf16.msrb.mxu0 %v1197_v45 }
  0x2b   :  { %644 = vmatpush.bf16.msrb.mxu1 %v1205_v46  ;;  %v1239_v36 = vpop.eup %1238 }
  0x2c   :  { %657 = vmatpush.bf16.msrb.mxu2 %v1213_v47  ;;  %v686_v37 = vmul.f32 32.0, %v1239_v36  ;;  %vm690_vm1 = vweird.f32 %v1239_v36  ;;  %v1225_v47 = vld [vmem:[%s1590_s5 + $0x8] sm:$0xff] }
  0x2d   :  { %670 = vmatpush.bf16.msrb.mxu3 %v1221_v48  ;;  %v1224_v48 = vld [vmem:[%s1590_s5] sm:$0xff] }
  0x2e   :  { %632 = vmatpush.bf16.msrb.mxu0 %v1196_v49  ;;  %v687_v38 = vsub.f32 1.0, %v686_v37 }
  0x2f   :  { %645 = vmatpush.bf16.msrb.mxu1 %v1204_v50 }
  0x30   :  { %658 = vmatpush.bf16.msrb.mxu2 %v1212_v51  ;;  %v688_v39 = vmul.f32 %v1239_v36, %v687_v38 }
  0x31   :  { %671 = vmatpush.bf16.msrb.mxu3 %v1220_v52  ;;  %v1227_v52 = vld [vmem:[%s1592_s7 + $0x8] sm:$0xff] }
  0x32   :  { %633 = vmatpush.bf16.msrb.mxu0 %v1195_v53  ;;  %v689_v40 = vadd.f32 %v1239_v36, %v688_v39  ;;  %v1226_v53 = vld [vmem:[%s1592_s7] sm:$0xff] }
  0x33   :  { %646 = vmatpush.bf16.msrb.mxu1 %v1203_v54 }
  0x34   :  { %659 = vmatpush.bf16.msrb.mxu2 %v1211_v55  ;;  %v691_v41 = vsel %vm690_vm1, %v1239_v36, %v689_v40 }
  0x35   :  { %672 = vmatpush.bf16.msrb.mxu3 %v1219_v56 }
  0x36   :  { %634 = vmatpush.bf16.msrb.mxu0 %v1194_v57 }
  0x37   :  { %647 = vmatpush.bf16.msrb.mxu1 %v1202_v58 }
  0x38   :  { %660 = vmatpush.bf16.msrb.mxu2 %v1210_v59 }
  0x39   :  { %673 = vmatpush.bf16.msrb.mxu3 %v1218_v60  ;;  %v1233_v60 = vld [vmem:[%s1588_s3] ss:$0 sm:$0xff] }
  0x3a   :  { %635 = vmatpush.bf16.msrb.mxu0 %v1193_v61 }
  0x3b   :  { %648 = vmatpush.bf16.msrb.mxu1 %v1201_v62  ;;  %v1234_v62 = vld [vmem:[%s1589_s4] ss:$0 sm:$0xff] }
  0x3c   :  { %661 = vmatpush.bf16.msrb.mxu2 %v1209_v63 }
  0x3d   :  { %674 = vmatpush.bf16.msrb.mxu3 %v1217_v0 }
  0x3e   :  { %636 = vmatpush.bf16.msrb.mxu0 %v1192_v1 }
  0x3f   :  { %649 = vmatpush.bf16.msrb.mxu1 %v1200_v2 }
  0x40   :  { %662 = vmatpush.bf16.msrb.mxu2 %v1208_v3 }
  0x41   :  { %675 = vmatpush.bf16.msrb.mxu3 %v1216_v4  ;;  %637 = vmatmul.bf16.vlgmr.msrb.gmra.mxu0 %v181_v5  ;;  %v1229_v4 = vld [vmem:[%s1594_s9 + $0x8] sm:$0xff]  ;;  %v1228_v5 = vld [vmem:[%s1594_s9] sm:$0xff] }
  0x42   :  { %650 = vmatmul.bf16.vlgmr.msrb.gmra.mxu1 %v182_v6  ;;  %753 = vmatpush.bf16.msra.mxu0 %v1225_v47  ;;  %v1235_v6 = vld [vmem:[%s1591_s6] ss:$0 sm:$0xff] }
  0x43   :  { %663 = vmatmul.bf16.vlgmr.msrb.gmra.mxu2 %v183_v7  ;;  %791 = vmatpush.bf16.msra.mxu1 %v1227_v52 }
  0x44   :  { %676 = vmatmul.bf16.vlgmr.msrb.gmra.mxu3 %v184_v8  ;;  %829 = vmatpush.bf16.msra.mxu2 %v1229_v4 }
  0x46   :  { %754 = vmatpush.bf16.msra.mxu0 %v1224_v48 }
  0x47   :  { %792 = vmatpush.bf16.msra.mxu1 %v1226_v53 }
  0x48   :  { %830 = vmatpush.bf16.msra.mxu2 %v1228_v5 }
  0x9e   :  { %v586_v9 = vpop.f32.mrf.mxu0 }
  0x9f   :  { %v599_v10 = vpop.f32.mrf.mxu1  ;;  %v587_v18 = vadd.f32 %v1232_v15, %v586_v9 }
  0xa1   :  { %v600_v19 = vadd.f32 %v599_v10, %v587_v18  ;;  %v836_v18 = vlaneseq }
  0xa6   :  { %v612_v11 = vpop.f32.mrf.mxu2  ;;  %v588_v13 = vpop.f32.mrf.mxu0 }
  0xa7   :  { %v625_v12 = vpop.f32.mrf.mxu3  ;;  %v601_v14 = vpop.f32.mrf.mxu1  ;;  %v613_v20 = vadd.f32 %v612_v11, %v600_v19  ;;  %v837_v19 = vand.u32 127, %v836_v18 }
  0xa9   :  { %v626_v21 = vadd.f32 %v625_v12, %v613_v20  ;;  %v1236_v12 = vld [vmem:[%s1593_s8] ss:$0 sm:$0xff]  ;;  %vm838_vm6 = vcmp.lt.s32.totalorder %v837_v19, 6 }
  0xaa   :  { %v1237_v20 = vld [vmem:[%s1595_s10] ss:$0 sm:$0xff] }
  0xae   :  { %v614_v16 = vpop.f32.mrf.mxu2 }
  0xaf   :  { %v627_v17 = vpop.f32.mrf.mxu3 }
  0xbe   :  { %v638_v22 = vpop.f32.mrf.mxu0 }
  0xbf   :  { %v651_v23 = vpop.f32.mrf.mxu1  ;;  %v639_v24 = vadd.f32 %v638_v22, %v626_v21 }
  0xc1   :  { %v652_v25 = vadd.f32 %v651_v23, %v639_v24 }
  0xc6   :  { %v664_v26 = vpop.f32.mrf.mxu2  ;;  %v640_v29 = vpop.f32.mrf.mxu0 }
  0xc7   :  { %v677_v27 = vpop.f32.mrf.mxu3  ;;  %v665_v28 = vadd.f32 %v664_v26, %v652_v25  ;;  %v653_v30 = vpop.f32.mrf.mxu1 }
  0xc9   :  { %v678_v31 = vadd.f32 %v677_v27, %v665_v28 }
  0xcb   :  { %v682_v32 = vsel %vm681_vm0, %v678_v31, 0.0 }
  0xcc   :  { %683 = vadd.xlane.f32.xlu0 %v682_v32 }
  0xce   :  { %v666_v33 = vpop.f32.mrf.mxu2 }
  0xcf   :  { %v679_v34 = vpop.f32.mrf.mxu3 }
 0x13f   :  { %v684_v42 = vpop.xlane.xlu0 %683 }
 0x140   :  { %v692_v43 = vmul.f32 %v691_v41, %v684_v42 }
 0x142   :  { %v693_v44 = vsub.f32 %v678_v31, %v692_v43 }
 0x144   :  { %v694_v45 = vmul.f32 %v693_v44, %v693_v44 }
 0x146   :  { %v695_v46 = vsel %vm681_vm0, %v694_v45, 0.0 }
 0x147   :  { %696 = vadd.xlane.f32.xlu0 %v695_v46 }
 0x1ba   :  { %v697_v49 = vpop.xlane.xlu0 %696 }
 0x1bb   :  { %v698_v50 = vmul.f32 %v697_v49, %v691_v41 }
 0x1bd   :  { %v699_v51 = vadd.f32 1e-05, %v698_v50 }
 0x1bf   :  { %1240 = vrsqrt.f32 %v699_v51  ;;  %vm706_vm3 = vweird.f32 %v699_v51 }
 0x1c5   :  { %v1241_v54 = vpop.eup %1240 }
 0x1c6   :  { %v701_v55 = vmul.f32 %v1241_v54, %v699_v51  ;;  %vm707_vm2 = vweird.f32 %v1241_v54 }
 0x1c7   :  { %vm708_vm4 = vmor %vm706_vm3, %vm707_vm2 }
 0x1c8   :  { %v702_v56 = vmul.f32 %v1241_v54, %v701_v55 }
 0x1ca   :  { %v703_v57 = vmul.f32 0.5, %v702_v56 }
 0x1cc   :  { %v704_v58 = vsub.f32 1.5, %v703_v57 }
 0x1ce   :  { %v705_v59 = vmul.f32 %v1241_v54, %v704_v58 }
 0x1d0   :  { %v709_v61 = vsel %vm708_vm4, %v1241_v54, %v705_v59 }
 0x1d1   :  { %v710_v63 = vmul.f32 %v709_v61, %v693_v44 }
 0x1d3   :  { %v715_v0 = vmul.f32 %v1233_v60, %v710_v63 }
 0x1d5   :  { %v720_v1 = vadd.f32 %v1234_v62, %v715_v0 }
 0x1d7   :  { %1242 = vtanh.f32 %v720_v1 }
 0x1dd   :  { %v1243_v2 = vpop.eup %1242 }
 0x1de   :  { %v722_v3 = vpack.c.bf16 %v1243_v2, %v1243_v2 }
 0x1e0   :  { %1141 = vmatmul.msk.bf16.vlgmr.msra.gmra.mxu0 %vm743_vm5, %v722_v3 }
 0x25d   :  { %v756_v7 = vpop.f32.mrf.mxu0 }
 0x25e   :  { %v757_v8 = vadd.f32 %v1235_v6, %v756_v7 }
 0x260   :  { %v760_v9 = vmax.f32 %v757_v8, 0.0 }
 0x262   :  { %v761_v10 = vpack.c.bf16 %v760_v9, %v760_v9 }
 0x264   :  { %1150 = vmatmul.msk.bf16.vlgmr.msra.gmra.mxu1 %vm743_vm5, %v761_v10 }
 0x265   :  { %v758_v11 = vpop.f32.mrf.mxu0 }
 0x2e1   :  { %v794_v13 = vpop.f32.mrf.mxu1 }
 0x2e2   :  { %v795_v14 = vadd.f32 %v1236_v12, %v794_v13 }
 0x2e4   :  { %v798_v15 = vmax.f32 %v795_v14, 0.0 }
 0x2e6   :  { %v799_v16 = vpack.c.bf16 %v798_v15, %v798_v15 }
 0x2e8   :  { %1159 = vmatmul.msk.bf16.vlgmr.msra.gmra.mxu2 %vm743_vm5, %v799_v16 }
 0x2e9   :  { %v796_v17 = vpop.f32.mrf.mxu1 }
 0x36b   :  { %v832_v21 = vpop.f32.mrf.mxu2 }
 0x36c   :  { %v833_v22 = vadd.f32 %v1237_v20, %v832_v21 }
 0x36e   :  { %v839_v23 = vsel %vm838_vm6, %v833_v22, -1e+30 }
 0x36f   :  { %v841_v24 = vsel %vm840_vm7, %v839_v23, -inf }
 0x370   :  { %842 = vmax.xlane.f32.xlu1 %v841_v24 }
 0x373   :  { %v834_v25 = vpop.f32.mrf.mxu2 }
 0x3e3   :  { %v843_v26 = vpop.xlane.xlu1 %842 }
 0x3e4   :  { %v844_v27 = vsub.f32 %v839_v23, %v843_v26 }
 0x3e6   :  { %v845_v28 = vmul.f32 1.442695, %v844_v27 }
 0x3e8   :  { %1244 = vpow2.f32 %v845_v28 }
 0x3ee   :  { %v1245_v29 = vpop.eup %1244 }
 0x3ef   :  { %v847_v30 = vsel %vm840_vm7, %v1245_v29, 0.0 }
 0x3f0   :  { %848 = vadd.xlane.f32.xlu1 %v847_v30 }
 0x463   :  { %v849_v31 = vpop.xlane.xlu1 %848 }
 0x464   :  { %1246 = vlog2.f32 %v849_v31 }
 0x46a   :  { %v1247_v32 = vpop.eup %1246 }
 0x46b   :  { %v851_v33 = vmul.f32 0.6931472, %v1247_v32 }
 0x46d   :  { %v852_v34 = vsub.f32 %v844_v27, %v851_v33 }
 0x46f   :  { %853 = vst [vmem:[%s1596_s11] sm:$0x3] %v852_v34  ;;  %v854_v35 = vmul.f32 1.442695, %v852_v34 }
 0x471   :  { %1248 = vpow2.f32 %v854_v35 }
 0x477   :  { %v1249_v36 = vpop.eup %1248 }
 0x478   :  { %856 = vst [vmem:[#allocation2] sm:$0x3] %v1249_v36 }
 0x479   :  { %869 = dma.vmem_to_hbm [thread:$0]  %s865_s18, 32, %s867_s1, [#allocation3]  }
 0x47a   :  { %1274 = dma.done.wait [#allocation3], 32  }
 0x47b   :  { %1275 = vsyncadd [#allocation3], 4294967264 }
 0x47c   :  { %876 = vsyncpa [#allocation3], 1 }

// kernel: actor_forward.2
= control target key start
LH: loop header
LB: loop body
LE: loop exit
PB: predicated region body
PF: predicated region fallthrough
CT: control target
= control target key end

     0   :  { %vm80_vm0 = vcmask 130048   ;;  %vm515_vm1 = vcmask 123904   ;;  %vm1713_vm2 = vcmask 125952   ;;  %s2727_s1 = inlined_call_operand.vmem [shape: bf16[4,16,16], index: 1, kind: input, shape index: {}]   ;;  %s2728_s0 = inlined_call_operand.vmem [shape: f32[2,9,9,16], index: 0, kind: input, shape index: {}]   ;;  %s2729_s2 = inlined_call_operand.vmem [shape: f32[1,16], index: 2, kind: input, shape index: {}]   ;;  %s2730_s3 = inlined_call_operand.vmem [shape: bf16[9,16,16], index: 3, kind: input, shape index: {}]   ;;  %s2731_s4 = inlined_call_operand.vmem [shape: f32[1,16], index: 4, kind: input, shape index: {}]   ;;  %s2732_s5 = inlined_call_operand.vmem [shape: bf16[2,8,8,16], index: 5, kind: output, shape index: {}]  }
   0x1   :  { %v1945_v0 = vld [vmem:[%s2727_s1 + $0x8] sm:$0xff]  ;;  %v2003_v2 = vld [vmem:[%s2728_s0 + $0x51] sm:$0xff]  ;;  %v1944_v12 = vld [vmem:[%s2727_s1] sm:$0xff] }
   0x2   :  { %v51_v1 = vld [vmem:[%s2728_s0 + $0x41] sm:$0xff]  ;;  %v55_v4 = vld [vmem:[%s2728_s0 + $0x91] sm:$0xff]  ;;  %1957 = vmatpush.bf16.msra.mxu1 %v1945_v0  ;;  %1958 = vmatpush.bf16.msra.mxu2 %v1945_v0 }
   0x3   :  { %v65_v3 = vpack.c.bf16 %v2003_v2, %v51_v1  ;;  %v2012_v5 = vld [vmem:[%s2728_s0 + $0xa1] sm:$0xff]  ;;  %v2017_v6 = vld [vmem:[%s2728_s0 + $0xd1] sm:$0xff]  ;;  %1959 = vmatpush.bf16.msra.mxu3 %v1945_v0  ;;  %112 = vmatpush.bf16.msra.mxu0 %v1945_v0 }
   0x4   :  { %v67_v7 = vpack.c.bf16 %v2012_v5, %v55_v4  ;;  %v2023_v8 = vld [vmem:[%s2728_s0 + $0xe1] sm:$0xff]  ;;  %v1946_v9 = vld [vmem:[%s2727_s1 + $0x10] sm:$0xff]  ;;  %v1947_v10 = vld [vmem:[%s2727_s1 + $0x18] sm:$0xff] }
   0x5   :  { %v69_v11 = vpack.c.bf16 %v2023_v8, %v2017_v6  ;;  %1742 = vmatmul.msk.bf16.vlgmr.msra.gmra.mxu1 %vm80_vm0, %v65_v3  ;;  %v47_v13 = vld [vmem:[%s2728_s0 + $0x1] sm:$0xff]  ;;  %v48_v14 = vld [vmem:[%s2728_s0 + $0x11] sm:$0xff] }
   0x6   :  { %298 = vmatpush.bf16.msrb.mxu2 %v1946_v9  ;;  %191 = vmatpush.bf16.msrb.mxu1 %v1944_v12  ;;  %v63_v15 = vpack.c.bf16 %v48_v14, %v47_v13  ;;  %v53_v16 = vld [vmem:[%s2728_s0 + $0x61] sm:$0xff]  ;;  %v54_v17 = vld [vmem:[%s2728_s0 + $0x71] sm:$0xff] }
   0x7   :  { %420 = vmatpush.bf16.msrb.mxu3 %v1947_v10  ;;  %1744 = vmatmul.msk.bf16.vlgmr.msra.gmra.mxu2 %vm80_vm0, %v67_v7  ;;  %v57_v18 = vld [vmem:[%s2728_s0 + $0xb1] sm:$0xff]  ;;  %v2058_v19 = vld [vmem:[%s2728_s0 + $0xc1] sm:$0xff]  ;;  %v66_v22 = vpack.c.bf16 %v54_v17, %v53_v16  ;;  %v374_v43 = vpack.c.bf16 %v53_v16, %v2003_v2 }
   0x8   :  { %1746 = vmatmul.msk.bf16.vlgmr.msra.gmra.mxu3 %vm80_vm0, %v69_v11  ;;  %1740 = vmatmul.msk.bf16.vlgmr.msra.gmra.mxu0 %vm80_vm0, %v63_v15  ;;  %v2063_v20 = vld [vmem:[%s2728_s0 + $0xf1] sm:$0xff]  ;;  %v2068_v21 = vld [vmem:[%s2728_s0 + $0x101] sm:$0xff]  ;;  %v68_v23 = vpack.c.bf16 %v2058_v19, %v57_v18  ;;  %v376_v55 = vpack.c.bf16 %v57_v18, %v2012_v5  ;;  %v377_v60 = vpack.c.bf16 %v2017_v6, %v2058_v19  ;;  %v1963_v11 = vmov 0.0  }
   0x9   :  { %v50_v24 = vld [vmem:[%s2728_s0 + $0x31] sm:$0xff]  ;;  %v70_v25 = vpack.c.bf16 %v2068_v21, %v2063_v20  ;;  %v1791_v26 = vld [vmem:[%s2728_s0 + $0x21] sm:$0xff]  ;;  %v378_v2 = vpack.c.bf16 %v2063_v20, %v2023_v8  ;;  %517 = vst.msk [vmem:[#allocation2 + $0x10] sm:$0xff] %vm80_vm0, %v1963_v11 }
   0xa   :  { %v64_v27 = vpack.c.bf16 %v50_v24, %v1791_v26  ;;  %v21_v28 = vld [vmem:[%s2728_s0] sm:$0xff]  ;;  %v22_v29 = vld [vmem:[%s2728_s0 + $0x10] sm:$0xff]  ;;  %v372_v33 = vpack.c.bf16 %v1791_v26, %v48_v14  ;;  %v373_v38 = vpack.c.bf16 %v51_v1, %v50_v24  ;;  %v1949_v3 = vld [vmem:[%s2730_s3 + $0x18] sm:$0xff]  ;;  %518 = vst.msk [vmem:[#allocation2 + $0x18] sm:$0x3] %vm515_vm1, %v1963_v11 }
   0xb   :  { %v1761_v30 = vld [vmem:[%s2728_s0 + $0x20] sm:$0xff]  ;;  %v37_v31 = vpack.c.bf16 %v22_v29, %v21_v28  ;;  %v24_v34 = vld [vmem:[%s2728_s0 + $0x30] sm:$0xff]  ;;  %694 = vmatpush.bf16.msrb.mxu0 %v1949_v3  ;;  %514 = vst.msk [vmem:[#allocation2] sm:$0xff] %vm80_vm0, %v1963_v11 }
   0xc   :  { %v250_v32 = vpack.c.bf16 %v1761_v30, %v22_v29  ;;  %v1763_v35 = vld [vmem:[%s2728_s0 + $0x40] sm:$0xff]  ;;  %v38_v36 = vpack.c.bf16 %v24_v34, %v1761_v30  ;;  %v26_v39 = vld [vmem:[%s2728_s0 + $0x50] sm:$0xff]  ;;  %516 = vst.msk [vmem:[#allocation2 + $0x8] sm:$0x3] %vm515_vm1, %v1963_v11 }
   0xd   :  { %v251_v37 = vpack.c.bf16 %v1763_v35, %v24_v34  ;;  %v1765_v40 = vld [vmem:[%s2728_s0 + $0x60] sm:$0xff]  ;;  %v39_v41 = vpack.c.bf16 %v26_v39, %v1763_v35  ;;  %v28_v44 = vld [vmem:[%s2728_s0 + $0x70] sm:$0xff]  ;;  %519 = vst.msk [vmem:[#allocation2 + $0x20] sm:$0xff] %vm80_vm0, %v1963_v11 }
   0xe   :  { %v252_v42 = vpack.c.bf16 %v1765_v40, %v26_v39  ;;  %v1767_v45 = vld [vmem:[%s2728_s0 + $0x80] sm:$0xff]  ;;  %v40_v47 = vpack.c.bf16 %v28_v44, %v1765_v40  ;;  %v29_v50 = vld [vmem:[%s2728_s0 + $0x90] sm:$0xff]  ;;  %520 = vst.msk [vmem:[#allocation2 + $0x28] sm:$0x3] %vm515_vm1, %v1963_v11 }
   0xf   :  { %v1797_v46 = vld [vmem:[%s2728_s0 + $0x81] sm:$0xff]  ;;  %v253_v48 = vpack.c.bf16 %v1767_v45, %v28_v44  ;;  %v1769_v52 = vld [vmem:[%s2728_s0 + $0xb0] sm:$0xff]  ;;  %521 = vst.msk [vmem:[#allocation2 + $0x30] sm:$0xff] %vm80_vm0, %v1963_v11 }
  0x10   :  { %v375_v49 = vpack.c.bf16 %v1797_v46, %v54_v17  ;;  %v30_v51 = vld [vmem:[%s2728_s0 + $0xa0] sm:$0xff]  ;;  %v1771_v57 = vld [vmem:[%s2728_s0 + $0xd0] sm:$0xff]  ;;  %522 = vst.msk [vmem:[#allocation2 + $0x38] sm:$0x3] %vm515_vm1, %v1963_v11 }
  0x11   :  { %v41_v53 = vpack.c.bf16 %v30_v51, %v29_v50  ;;  %v254_v54 = vpack.c.bf16 %v1769_v52, %v30_v51  ;;  %v32_v56 = vld [vmem:[%s2728_s0 + $0xc0] sm:$0xff]  ;;  %v1773_v62 = vld [vmem:[%s2728_s0 + $0xf0] sm:$0xff]  ;;  %523 = vst.msk [vmem:[#allocation2 + $0x40] sm:$0xff] %vm80_vm0, %v1963_v11 }
  0x12   :  { %v42_v58 = vpack.c.bf16 %v32_v56, %v1769_v52  ;;  %v255_v59 = vpack.c.bf16 %v1771_v57, %v32_v56  ;;  %v34_v61 = vld [vmem:[%s2728_s0 + $0xe0] sm:$0xff]  ;;  %v1775_v8 = vld [vmem:[%s2728_s0 + $0x110] sm:$0xff]  ;;  %524 = vst.msk [vmem:[#allocation2 + $0x48] sm:$0x3] %vm515_vm1, %v1963_v11 }
  0x13   :  { %v43_v63 = vpack.c.bf16 %v34_v61, %v1771_v57  ;;  %v256_v0 = vpack.c.bf16 %v1773_v62, %v34_v61  ;;  %v36_v7 = vld [vmem:[%s2728_s0 + $0x100] sm:$0xff]  ;;  %v1805_v9 = vld [vmem:[%s2728_s0 + $0x111] sm:$0xff]  ;;  %525 = vst.msk [vmem:[#allocation2 + $0x50] sm:$0xff] %vm80_vm0, %v1963_v11 }
  0x14   :  { %v44_v13 = vpack.c.bf16 %v36_v7, %v1773_v62  ;;  %v257_v14 = vpack.c.bf16 %v1775_v8, %v36_v7  ;;  %v379_v16 = vpack.c.bf16 %v1805_v9, %v2068_v21  ;;  %526 = vst.msk [vmem:[#allocation2 + $0x58] sm:$0x3] %vm515_vm1, %v1963_v11  ;;  %v1948_v20 = vld [vmem:[%s2730_s3] sm:$0xff]  ;;  %v1951_v21 = vld [vmem:[%s2730_s3 + $0x8] sm:$0xff] }
  0x15   :  { %1743 = vmatmul.msk.bf16.gmra.mxu1 %vm80_vm0, %v66_v22  ;;  %527 = vst.msk [vmem:[#allocation2 + $0x60] sm:$0xff] %vm80_vm0, %v1963_v11  ;;  %1033 = vmatpush.bf16.msra.mxu3 %v1951_v21  ;;  %v913_v44 = vld [vmem:[#allocation2 + $0x1] sm:$0xff] }
  0x16   :  { %528 = vst.msk [vmem:[#allocation2 + $0x68] sm:$0x3] %vm515_vm1, %v1963_v11  ;;  %785 = vmatpush.bf16.msra.mxu1 %v1948_v20  ;;  %v933_v50 = vpack.c.bf16 %v913_v44, %v913_v44 }
  0x17   :  { %1745 = vmatmul.msk.bf16.gmra.mxu2 %vm80_vm0, %v68_v23  ;;  %529 = vst.msk [vmem:[#allocation2 + $0x70] sm:$0xff] %vm80_vm0, %v1963_v11 }
  0x18   :  { %1747 = vmatmul.msk.bf16.gmra.mxu3 %vm80_vm0, %v70_v25  ;;  %1741 = vmatmul.msk.bf16.gmra.mxu0 %vm80_vm0, %v64_v27  ;;  %530 = vst.msk [vmem:[#allocation2 + $0x78] sm:$0x3] %vm515_vm1, %v1963_v11  ;;  %v1950_v25 = vld [vmem:[%s2730_s3 + $0x30] sm:$0xff] }
  0x19   :  { %531 = vst.msk [vmem:[#allocation2 + $0x80] sm:$0xff] %vm80_vm0, %v1963_v11  ;;  %855 = vmatpush.bf16.msra.mxu2 %v1950_v25 }
  0x1a   :  { %532 = vst.msk [vmem:[#allocation2 + $0x88] sm:$0x3] %vm515_vm1, %v1963_v11 }
  0x1b   :  { %533 = vst.msk [vmem:[#allocation2 + $0x90] sm:$0xff] %vm80_vm0, %v1963_v11 }
  0x1c   :  { %534 = vst.msk [vmem:[#allocation2 + $0x98] sm:$0x3] %vm515_vm1, %v1963_v11 }
  0x1d   :  { %535 = vst.msk [vmem:[#allocation2 + $0xa0] sm:$0xff] %vm80_vm0, %v1963_v11 }
  0x1e   :  { %536 = vst.msk [vmem:[#allocation2 + $0xa8] sm:$0x3] %vm515_vm1, %v1963_v11 }
  0x1f   :  { %537 = vst.msk [vmem:[#allocation2 + $0xb0] sm:$0xff] %vm80_vm0, %v1963_v11 }
  0x20   :  { %538 = vst.msk [vmem:[#allocation2 + $0xb8] sm:$0x3] %vm515_vm1, %v1963_v11 }
  0x21   :  { %539 = vst.msk [vmem:[#allocation2 + $0xc0] sm:$0xff] %vm80_vm0, %v1963_v11 }
  0x22   :  { %540 = vst.msk [vmem:[#allocation2 + $0xc8] sm:$0x3] %vm515_vm1, %v1963_v11 }
  0x23   :  { %541 = vst.msk [vmem:[#allocation2 + $0xd0] sm:$0xff] %vm80_vm0, %v1963_v11 }
  0x24   :  { %542 = vst.msk [vmem:[#allocation2 + $0xd8] sm:$0x3] %vm515_vm1, %v1963_v11 }
  0x25   :  { %1752 = vmatmul.msk.bf16.vlgmr.msrb.gmra.mxu1 %vm80_vm0, %v37_v31  ;;  %v2263_v31 = vld [vmem:[%s2729_s2] ss:$0 sm:$0xff]  ;;  %543 = vst.msk [vmem:[#allocation2 + $0xe0] sm:$0xff] %vm80_vm0, %v1963_v11 }
  0x26   :  { %544 = vst.msk [vmem:[#allocation2 + $0xe8] sm:$0x3] %vm515_vm1, %v1963_v11 }
  0x27   :  { %1782 = vmatmul.msk.bf16.vlgmr.msrb.gmra.mxu2 %vm80_vm0, %v250_v32  ;;  %v1952_v32 = vld [vmem:[%s2730_s3 + $0x20] sm:$0xff]  ;;  %545 = vst.msk [vmem:[#allocation2 + $0xf0] sm:$0xff] %vm80_vm0, %v1963_v11 }
  0x28   :  { %1812 = vmatmul.msk.bf16.vlgmr.msrb.gmra.mxu3 %vm80_vm0, %v372_v33  ;;  %1143 = vmatpush.bf16.msra.mxu0 %v1952_v32  ;;  %546 = vst.msk [vmem:[#allocation2 + $0xf8] sm:$0x3] %vm515_vm1, %v1963_v11 }
  0x29   :  { %547 = vst.msk [vmem:[#allocation2 + $0x100] sm:$0xff] %vm80_vm0, %v1963_v11 }
  0x2a   :  { %548 = vst.msk [vmem:[#allocation2 + $0x108] sm:$0x3] %vm515_vm1, %v1963_v11 }
  0x2b   :  { %549 = vst.msk [vmem:[#allocation2 + $0x110] sm:$0xff] %vm80_vm0, %v1963_v11 }
  0x2c   :  { %550 = vst.msk [vmem:[#allocation2 + $0x118] sm:$0x3] %vm515_vm1, %v1963_v11 }
  0x2d   :  { %551 = vst.msk [vmem:[#allocation2 + $0x120] sm:$0xff] %vm80_vm0, %v1963_v11 }
  0x2e   :  { %552 = vst.msk [vmem:[#allocation2 + $0x128] sm:$0x3] %vm515_vm1, %v1963_v11 }
  0x2f   :  { %553 = vst.msk [vmem:[#allocation2 + $0x130] sm:$0xff] %vm80_vm0, %v1963_v11 }
  0x30   :  { %554 = vst.msk [vmem:[#allocation2 + $0x138] sm:$0x3] %vm515_vm1, %v1963_v11 }
  0x35   :  { %1753 = vmatmul.msk.bf16.gmra.mxu1 %vm80_vm0, %v38_v36 }
  0x37   :  { %1783 = vmatmul.msk.bf16.gmra.mxu2 %vm80_vm0, %v251_v37 }
  0x38   :  { %1813 = vmatmul.msk.bf16.gmra.mxu3 %vm80_vm0, %v373_v38 }
  0x45   :  { %1754 = vmatmul.msk.bf16.gmra.mxu1 %vm80_vm0, %v39_v41 }
  0x47   :  { %1784 = vmatmul.msk.bf16.gmra.mxu2 %vm80_vm0, %v252_v42  ;;  %v572_v42 = vld [vmem:[#allocation2] sm:$0xff] }
  0x48   :  { %1814 = vmatmul.msk.bf16.gmra.mxu3 %vm80_vm0, %v374_v43 }
  0x55   :  { %1755 = vmatmul.msk.bf16.gmra.mxu1 %vm80_vm0, %v40_v47  ;;  %v592_v47 = vpack.c.bf16 %v572_v42, %v572_v42 }
  0x57   :  { %1785 = vmatmul.msk.bf16.gmra.mxu2 %vm80_vm0, %v253_v48 }
  0x58   :  { %1815 = vmatmul.msk.bf16.gmra.mxu3 %vm80_vm0, %v375_v49 }
  0x65   :  { %1756 = vmatmul.msk.bf16.gmra.mxu1 %vm80_vm0, %v41_v53 }
  0x67   :  { %1786 = vmatmul.msk.bf16.gmra.mxu2 %vm80_vm0, %v254_v54  ;;  %v738_v54 = vunpack.c.l.b16 %v592_v47 }
  0x68   :  { %1816 = vmatmul.msk.bf16.gmra.mxu3 %vm80_vm0, %v376_v55 }
  0x75   :  { %1757 = vmatmul.msk.bf16.gmra.mxu1 %vm80_vm0, %v42_v58 }
  0x77   :  { %1787 = vmatmul.msk.bf16.gmra.mxu2 %vm80_vm0, %v255_v59 }
  0x78   :  { %1817 = vmatmul.msk.bf16.gmra.mxu3 %vm80_vm0, %v377_v60  ;;  %v972_v60 = vunpack.c.l.b16 %v933_v50 }
  0x82   :  { %v2156_v1 = vpop.f32.mrf.mxu1 }
  0x85   :  { %1758 = vmatmul.msk.bf16.gmra.mxu1 %vm80_vm0, %v43_v63  ;;  %v114_v22 = vpop.f32.mrf.mxu0 }
  0x87   :  { %1788 = vmatmul.msk.bf16.gmra.mxu2 %vm80_vm0, %v256_v0 }
  0x88   :  { %1818 = vmatmul.msk.bf16.gmra.mxu3 %vm80_vm0, %v378_v2 }
  0x8a   :  { %v2166_v4 = vpop.f32.mrf.mxu2  ;;  %v2170_v6 = vpop.f32.mrf.mxu1 }
  0x8b   :  { %v2168_v5 = vpop.f32.mrf.mxu3 }
  0x8d   :  { %v116_v33 = vpop.f32.mrf.mxu0 }
  0x92   :  { %v2181_v10 = vpop.f32.mrf.mxu2  ;;  %v2189_v15 = vpop.f32.mrf.mxu1 }
  0x93   :  { %v2185_v12 = vpop.f32.mrf.mxu3 }
  0x95   :  { %1759 = vmatmul.msk.bf16.gmra.mxu1 %vm80_vm0, %v44_v13  ;;  %v119_v46 = vpop.f32.mrf.mxu0 }
  0x97   :  { %1789 = vmatmul.msk.bf16.gmra.mxu2 %vm80_vm0, %v257_v14 }
  0x98   :  { %1819 = vmatmul.msk.bf16.gmra.mxu3 %vm80_vm0, %v379_v16 }
  0x9a   :  { %v2207_v17 = vpop.f32.mrf.mxu2  ;;  %v2215_v19 = vpop.f32.mrf.mxu1 }
  0x9b   :  { %v2211_v18 = vpop.f32.mrf.mxu3 }
  0x9d   :  { %v121_v8 = vpop.f32.mrf.mxu0 }
  0xa2   :  { %v2235_v23 = vpop.f32.mrf.mxu2  ;;  %v193_v26 = vpop.f32.mrf.mxu1 }
  0xa3   :  { %v2239_v24 = vpop.f32.mrf.mxu3  ;;  %v194_v27 = vadd.f32 %v193_v26, %v114_v22 }
  0xaa   :  { %v300_v28 = vpop.f32.mrf.mxu2  ;;  %v195_v34 = vpop.f32.mrf.mxu1 }
  0xab   :  { %v340_v29 = vadd.f32 %v300_v28, %v194_v27  ;;  %v422_v30 = vpop.f32.mrf.mxu3  ;;  %v196_v38 = vadd.f32 %v195_v34, %v116_v33 }
  0xad   :  { %v462_v35 = vadd.f32 %v422_v30, %v340_v29 }
  0xaf   :  { %v482_v36 = vadd.f32 %v2263_v31, %v462_v35 }
  0xb1   :  { %v498_v37 = vmax.f32 %v482_v36, 0.0 }
  0xb2   :  { %v302_v39 = vpop.f32.mrf.mxu2  ;;  %v198_v43 = vpop.f32.mrf.mxu1 }
  0xb3   :  { %556 = vst.msk [vmem:[#allocation2 + $0x11] sm:$0xff] %vm80_vm0, %v498_v37  ;;  %v341_v40 = vadd.f32 %v302_v39, %v196_v38  ;;  %v424_v41 = vpop.f32.mrf.mxu3  ;;  %v199_v49 = vadd.f32 %v198_v43, %v119_v46 }
  0xb5   :  { %v463_v45 = vadd.f32 %v424_v41, %v341_v40 }
  0xb7   :  { %v483_v48 = vadd.f32 %v2263_v31, %v463_v45 }
  0xb9   :  { %v499_v51 = vmax.f32 %v483_v48, 0.0 }
  0xba   :  { %v305_v52 = vpop.f32.mrf.mxu2  ;;  %v573_v53 = vld [vmem:[#allocation2 + $0x10] sm:$0xff]  ;;  %v200_v61 = vpop.f32.mrf.mxu1 }
  0xbb   :  { %v914_v55 = vld [vmem:[#allocation2 + $0x11] sm:$0xff]  ;;  %557 = vst.msk [vmem:[#allocation2 + $0x21] sm:$0xff] %vm80_vm0, %v499_v51  ;;  %v342_v56 = vadd.f32 %v305_v52, %v199_v49  ;;  %v427_v57 = vpop.f32.mrf.mxu3  ;;  %v593_v58 = vpack.c.bf16 %v573_v53, %v573_v53  ;;  %v201_v11 = vadd.f32 %v200_v61, %v121_v8 }
  0xbc   :  { %v934_v59 = vpack.c.bf16 %v914_v55, %v914_v55 }
  0xbd   :  { %v464_v62 = vadd.f32 %v427_v57, %v342_v56  ;;  %v633_v63 = vunpack.c.l.b16 %v593_v58 }
  0xbe   :  { %v2302_v0 = vunpack.c.l.b16 %v934_v59 }
  0xbf   :  { %v484_v2 = vadd.f32 %v2263_v31, %v464_v62  ;;  %v740_v3 = vpack.c.b16 %v633_v63, %v738_v54 }
  0xc0   :  { %v988_v7 = vpack.c.b16 %v2302_v0, %v972_v60 }
  0xc1   :  { %v500_v9 = vmax.f32 %v484_v2, 0.0  ;;  %1838 = vmatmul.msk.bf16.vlgmr.msra.gmra.mxu1 %vm80_vm0, %v740_v3 }
  0xc2   :  { %1866 = vmatmul.msk.bf16.vlgmr.msra.gmra.mxu3 %vm80_vm0, %v988_v7  ;;  %v307_v13 = vpop.f32.mrf.mxu2  ;;  %v574_v14 = vld [vmem:[#allocation2 + $0x20] sm:$0xff]  ;;  %v203_v26 = vpop.f32.mrf.mxu1 }
  0xc3   :  { %v915_v16 = vld [vmem:[#allocation2 + $0x21] sm:$0xff]  ;;  %558 = vst.msk [vmem:[#allocation2 + $0x31] sm:$0xff] %vm80_vm0, %v500_v9  ;;  %v343_v20 = vadd.f32 %v307_v13, %v201_v11  ;;  %v429_v21 = vpop.f32.mrf.mxu3  ;;  %v594_v22 = vpack.c.bf16 %v574_v14, %v574_v14  ;;  %v204_v35 = vadd.f32 %v203_v26, %v2156_v1 }
  0xc4   :  { %v935_v25 = vpack.c.bf16 %v915_v16, %v915_v16 }
  0xc5   :  { %v465_v27 = vadd.f32 %v429_v21, %v343_v20  ;;  %v634_v28 = vunpack.c.l.b16 %v594_v22 }
  0xc6   :  { %v2309_v29 = vunpack.c.l.b16 %v935_v25 }
  0xc7   :  { %v485_v30 = vadd.f32 %v2263_v31, %v465_v27  ;;  %v649_v32 = vpack.c.b16 %v634_v28, %v633_v63 }
  0xc8   :  { %v1098_v33 = vpack.c.b16 %v2309_v29, %v2302_v0 }
  0xc9   :  { %v501_v34 = vmax.f32 %v485_v30, 0.0  ;;  %1826 = vmatmul.msk.bf16.vlgmr.msrb.gmra.mxu0 %vm80_vm0, %v649_v32 }
  0xca   :  { %v310_v36 = vpop.f32.mrf.mxu2  ;;  %v575_v37 = vld [vmem:[#allocation2 + $0x30] sm:$0xff]  ;;  %v205_v43 = vpop.f32.mrf.mxu1 }
  0xcb   :  { %v916_v38 = vld [vmem:[#allocation2 + $0x31] sm:$0xff]  ;;  %559 = vst.msk [vmem:[#allocation2 + $0x41] sm:$0xff] %vm80_vm0, %v501_v34  ;;  %v344_v39 = vadd.f32 %v310_v36, %v204_v35  ;;  %v432_v40 = vpop.f32.mrf.mxu3  ;;  %v595_v41 = vpack.c.bf16 %v575_v37, %v575_v37  ;;  %v206_v50 = vadd.f32 %v205_v43, %v2170_v6 }
  0xcc   :  { %v936_v42 = vpack.c.bf16 %v916_v38, %v916_v38 }
  0xcd   :  { %v466_v44 = vadd.f32 %v432_v40, %v344_v39  ;;  %v635_v45 = vunpack.c.l.b16 %v595_v41 }
  0xce   :  { %v2317_v46 = vunpack.c.l.b16 %v936_v42 }
  0xcf   :  { %v486_v47 = vadd.f32 %v2263_v31, %v466_v44  ;;  %v741_v48 = vpack.c.b16 %v635_v45, %v634_v28 }
  0xd0   :  { %v2322_v1 = vpack.c.b16 %v2317_v46, %v2309_v29 }
  0xd1   :  { %v502_v49 = vmax.f32 %v486_v47, 0.0  ;;  %1839 = vmatmul.msk.bf16.gmra.mxu1 %vm80_vm0, %v741_v48  ;;  %1852 = vmatmul.msk.bf16.vlgmr.msra.gmra.mxu2 %vm80_vm0, %v741_v48 }
  0xd2   :  { %1867 = vmatmul.msk.bf16.gmra.mxu3 %vm80_vm0, %v2322_v1  ;;  %v312_v51 = vpop.f32.mrf.mxu2  ;;  %v576_v52 = vld [vmem:[#allocation2 + $0x40] sm:$0xff]  ;;  %v208_v58 = vpop.f32.mrf.mxu1 }
  0xd3   :  { %v917_v53 = vld [vmem:[#allocation2 + $0x41] sm:$0xff]  ;;  %560 = vst.msk [vmem:[#allocation2 + $0x51] sm:$0xff] %vm80_vm0, %v502_v49  ;;  %v345_v54 = vadd.f32 %v312_v51, %v206_v50  ;;  %v434_v55 = vpop.f32.mrf.mxu3  ;;  %v596_v56 = vpack.c.bf16 %v576_v52, %v576_v52  ;;  %v209_v3 = vadd.f32 %v208_v58, %v2189_v15 }
  0xd4   :  { %v937_v57 = vpack.c.bf16 %v917_v53, %v917_v53 }
  0xd5   :  { %v467_v59 = vadd.f32 %v434_v55, %v345_v54  ;;  %v636_v60 = vunpack.c.l.b16 %v596_v56 }
  0xd6   :  { %v2330_v6 = vunpack.c.l.b16 %v937_v57 }
  0xd7   :  { %v487_v61 = vadd.f32 %v2263_v31, %v467_v59  ;;  %v650_v62 = vpack.c.b16 %v636_v60, %v635_v45 }
  0xd8   :  { %v1099_v63 = vpack.c.b16 %v2330_v6, %v2317_v46 }
  0xd9   :  { %v503_v2 = vmax.f32 %v487_v61, 0.0  ;;  %1827 = vmatmul.msk.bf16.gmra.mxu0 %vm80_vm0, %v650_v62 }
  0xda   :  { %v315_v7 = vpop.f32.mrf.mxu2  ;;  %v577_v8 = vld [vmem:[#allocation2 + $0x50] sm:$0xff]  ;;  %v210_v20 = vpop.f32.mrf.mxu1 }
  0xdb   :  { %v918_v9 = vld [vmem:[#allocation2 + $0x51] sm:$0xff]  ;;  %561 = vst.msk [vmem:[#allocation2 + $0x61] sm:$0xff] %vm80_vm0, %v503_v2  ;;  %v346_v11 = vadd.f32 %v315_v7, %v209_v3  ;;  %v437_v13 = vpop.f32.mrf.mxu3  ;;  %v597_v14 = vpack.c.bf16 %v577_v8, %v577_v8  ;;  %v211_v30 = vadd.f32 %v210_v20, %v2215_v19  ;;  %v923_v20 = vld [vmem:[#allocation2 + $0xa1] sm:$0xff] }
  0xdc   :  { %v938_v16 = vpack.c.bf16 %v918_v9, %v918_v9 }
  0xdd   :  { %v468_v21 = vadd.f32 %v437_v13, %v346_v11  ;;  %v637_v22 = vunpack.c.l.b16 %v597_v14  ;;  %v582_v13 = vld [vmem:[#allocation2 + $0xa0] sm:$0xff]  ;;  %v581_v14 = vld [vmem:[#allocation2 + $0x90] sm:$0xff] }
  0xde   :  { %v2338_v25 = vunpack.c.l.b16 %v938_v16 }
  0xdf   :  { %v488_v26 = vadd.f32 %v2263_v31, %v468_v21  ;;  %v742_v27 = vpack.c.b16 %v637_v22, %v636_v60 }
  0xe0   :  { %v2343_v15 = vpack.c.b16 %v2338_v25, %v2330_v6 }
  0xe1   :  { %v504_v28 = vmax.f32 %v488_v26, 0.0  ;;  %1840 = vmatmul.msk.bf16.gmra.mxu1 %vm80_vm0, %v742_v27  ;;  %1853 = vmatmul.msk.bf16.gmra.mxu2 %vm80_vm0, %v742_v27  ;;  %v601_v26 = vpack.c.bf16 %v581_v14, %v581_v14 }
  0xe2   :  { %1868 = vmatmul.msk.bf16.gmra.mxu3 %vm80_vm0, %v2343_v15  ;;  %v317_v32 = vpop.f32.mrf.mxu2  ;;  %v578_v34 = vld [vmem:[#allocation2 + $0x60] sm:$0xff]  ;;  %v213_v40 = vpop.f32.mrf.mxu1 }
  0xe3   :  { %v919_v35 = vld [vmem:[#allocation2 + $0x61] sm:$0xff]  ;;  %562 = vst.msk [vmem:[#allocation2 + $0x71] sm:$0xff] %vm80_vm0, %v504_v28  ;;  %v347_v36 = vadd.f32 %v317_v32, %v211_v30  ;;  %v439_v37 = vpop.f32.mrf.mxu3  ;;  %v598_v38 = vpack.c.bf16 %v578_v34, %v578_v34  ;;  %v214_v48 = vadd.f32 %v213_v40, %v2166_v4  ;;  %v943_v30 = vpack.c.bf16 %v923_v20, %v923_v20 }
  0xe4   :  { %v939_v39 = vpack.c.bf16 %v919_v35, %v919_v35 }
  0xe5   :  { %v469_v41 = vadd.f32 %v439_v37, %v347_v36  ;;  %v638_v42 = vunpack.c.l.b16 %v598_v38  ;;  %v832_v38 = vunpack.c.l.b16 %v601_v26 }
  0xe6   :  { %v2351_v19 = vunpack.c.l.b16 %v939_v39 }
  0xe7   :  { %v489_v43 = vadd.f32 %v2263_v31, %v469_v41  ;;  %v651_v44 = vpack.c.b16 %v638_v42, %v637_v22  ;;  %v602_v22 = vpack.c.bf16 %v582_v13, %v582_v13 }
  0xe8   :  { %v1100_v45 = vpack.c.b16 %v2351_v19, %v2338_v25 }
  0xe9   :  { %v505_v47 = vmax.f32 %v489_v43, 0.0  ;;  %1828 = vmatmul.msk.bf16.gmra.mxu0 %vm80_vm0, %v651_v44  ;;  %v739_v37 = vunpack.c.l.b16 %v602_v22  ;;  %v980_v44 = vunpack.c.l.b16 %v943_v30 }
  0xea   :  { %v320_v49 = vpop.f32.mrf.mxu2  ;;  %v579_v50 = vld [vmem:[#allocation2 + $0x70] sm:$0xff]  ;;  %v215_v56 = vpop.f32.mrf.mxu1 }
  0xeb   :  { %v920_v51 = vld [vmem:[#allocation2 + $0x71] sm:$0xff]  ;;  %563 = vst.msk [vmem:[#allocation2 + $0x81] sm:$0xff] %vm80_vm0, %v505_v47  ;;  %v348_v52 = vadd.f32 %v320_v49, %v214_v48  ;;  %v442_v53 = vpop.f32.mrf.mxu3  ;;  %v599_v54 = vpack.c.bf16 %v579_v50, %v579_v50  ;;  %v216_v2 = vadd.f32 %v215_v56, %v2181_v10 }
  0xec   :  { %v940_v55 = vpack.c.bf16 %v920_v51, %v920_v51 }
  0xed   :  { %v470_v57 = vadd.f32 %v442_v53, %v348_v52  ;;  %v639_v58 = vunpack.c.l.b16 %v599_v54 }
  0xee   :  { %v2359_v59 = vunpack.c.l.b16 %v940_v55 }
  0xef   :  { %v490_v60 = vadd.f32 %v2263_v31, %v470_v57  ;;  %v743_v61 = vpack.c.b16 %v639_v58, %v638_v42 }
  0xf0   :  { %v2364_v4 = vpack.c.b16 %v2359_v59, %v2351_v19 }
  0xf1   :  { %v506_v62 = vmax.f32 %v490_v60, 0.0  ;;  %1841 = vmatmul.msk.bf16.gmra.mxu1 %vm80_vm0, %v743_v61  ;;  %1854 = vmatmul.msk.bf16.gmra.mxu2 %vm80_vm0, %v743_v61 }
  0xf2   :  { %1869 = vmatmul.msk.bf16.gmra.mxu3 %vm80_vm0, %v2364_v4  ;;  %v322_v3 = vpop.f32.mrf.mxu2  ;;  %v580_v7 = vld [vmem:[#allocation2 + $0x80] sm:$0xff]  ;;  %v218_v16 = vpop.f32.mrf.mxu1 }
  0xf3   :  { %564 = vst.msk [vmem:[#allocation2 + $0xb1] sm:$0xff] %vm80_vm0, %v506_v62  ;;  %v349_v8 = vadd.f32 %v322_v3, %v216_v2  ;;  %v444_v9 = vpop.f32.mrf.mxu3  ;;  %v600_v11 = vpack.c.bf16 %v580_v7, %v580_v7  ;;  %v219_v34 = vadd.f32 %v218_v16, %v2207_v17  ;;  %v921_v6 = vld [vmem:[#allocation2 + $0x81] sm:$0xff] }
  0xf5   :  { %v471_v21 = vadd.f32 %v444_v9, %v349_v8  ;;  %v640_v10 = vunpack.c.l.b16 %v600_v11 }
  0xf7   :  { %v491_v27 = vadd.f32 %v2263_v31, %v471_v21  ;;  %v652_v28 = vpack.c.b16 %v640_v10, %v639_v58  ;;  %v834_v52 = vpack.c.b16 %v832_v38, %v640_v10 }
  0xf9   :  { %v507_v32 = vmax.f32 %v491_v27, 0.0  ;;  %1829 = vmatmul.msk.bf16.gmra.mxu0 %vm80_vm0, %v652_v28 }
  0xfa   :  { %v325_v35 = vpop.f32.mrf.mxu2  ;;  %v583_v36 = vld [vmem:[#allocation2 + $0xb0] sm:$0xff]  ;;  %v220_v47 = vpop.f32.mrf.mxu1 }
  0xfb   :  { %v924_v39 = vld [vmem:[#allocation2 + $0xb1] sm:$0xff]  ;;  %565 = vst.msk [vmem:[#allocation2 + $0xc1] sm:$0xff] %vm80_vm0, %v507_v32  ;;  %v350_v40 = vadd.f32 %v325_v35, %v219_v34  ;;  %v447_v41 = vpop.f32.mrf.mxu3  ;;  %v603_v42 = vpack.c.bf16 %v583_v36, %v583_v36  ;;  %v221_v55 = vadd.f32 %v220_v47, %v2235_v23 }
  0xfc   :  { %v944_v43 = vpack.c.bf16 %v924_v39, %v924_v39 }
  0xfd   :  { %v472_v48 = vadd.f32 %v447_v41, %v350_v40  ;;  %v641_v49 = vunpack.c.l.b16 %v603_v42 }
  0xfe   :  { %v2376_v50 = vunpack.c.l.b16 %v944_v43 }
  0xff   :  { %v492_v17 = vadd.f32 %v2263_v31, %v472_v48  ;;  %v744_v51 = vpack.c.b16 %v641_v49, %v739_v37 }
 0x100   :  { %v992_v53 = vpack.c.b16 %v2376_v50, %v980_v44 }
 0x101   :  { %v508_v54 = vmax.f32 %v492_v17, 0.0  ;;  %1842 = vmatmul.msk.bf16.gmra.mxu1 %vm80_vm0, %v744_v51  ;;  %1855 = vmatmul.msk.bf16.gmra.mxu2 %vm80_vm0, %v834_v52 }
 0x102   :  { %1870 = vmatmul.msk.bf16.gmra.mxu3 %vm80_vm0, %v992_v53  ;;  %v327_v56 = vpop.f32.mrf.mxu2  ;;  %v584_v57 = vld [vmem:[#allocation2 + $0xc0] sm:$0xff]  ;;  %v223_v3 = vpop.f32.mrf.mxu1 }
 0x103   :  { %v925_v58 = vld [vmem:[#allocation2 + $0xc1] sm:$0xff]  ;;  %566 = vst.msk [vmem:[#allocation2 + $0xd1] sm:$0xff] %vm80_vm0, %v508_v54  ;;  %v351_v60 = vadd.f32 %v327_v56, %v221_v55  ;;  %v449_v61 = vpop.f32.mrf.mxu3  ;;  %v604_v62 = vpack.c.bf16 %v584_v57, %v584_v57  ;;  %v224_v16 = vadd.f32 %v223_v3, %v2168_v5 }
 0x104   :  { %v945_v2 = vpack.c.bf16 %v925_v58, %v925_v58 }
 0x105   :  { %v473_v7 = vadd.f32 %v449_v61, %v351_v60  ;;  %v642_v8 = vunpack.c.l.b16 %v604_v62 }
 0x106   :  { %v2385_v9 = vunpack.c.l.b16 %v945_v2 }
 0x107   :  { %v493_v23 = vadd.f32 %v2263_v31, %v473_v7  ;;  %v653_v11 = vpack.c.b16 %v642_v8, %v641_v49 }
 0x108   :  { %v1102_v13 = vpack.c.b16 %v2385_v9, %v2376_v50 }
 0x109   :  { %v509_v14 = vmax.f32 %v493_v23, 0.0  ;;  %1830 = vmatmul.msk.bf16.gmra.mxu0 %vm80_vm0, %v653_v11  ;;  %v1953_v11 = vld [vmem:[%s2730_s3 + $0x38] sm:$0xff] }
 0x10a   :  { %v330_v20 = vpop.f32.mrf.mxu2  ;;  %v585_v21 = vld [vmem:[#allocation2 + $0xd0] sm:$0xff]  ;;  %v225_v30 = vpop.f32.mrf.mxu1  ;;  %1229 = vmatpush.bf16.msrb.mxu1 %v1953_v11 }
 0x10b   :  { %v926_v10 = vld [vmem:[#allocation2 + $0xd1] sm:$0xff]  ;;  %567 = vst.msk [vmem:[#allocation2 + $0xe1] sm:$0xff] %vm80_vm0, %v509_v14  ;;  %v352_v22 = vadd.f32 %v330_v20, %v224_v16  ;;  %v452_v26 = vpop.f32.mrf.mxu3  ;;  %v605_v27 = vpack.c.bf16 %v585_v21, %v585_v21  ;;  %v226_v39 = vadd.f32 %v225_v30, %v2185_v12 }
 0x10c   :  { %v946_v28 = vpack.c.bf16 %v926_v10, %v926_v10  ;;  %v1954_v16 = vld [vmem:[%s2730_s3 + $0x10] sm:$0xff] }
 0x10d   :  { %v474_v32 = vadd.f32 %v452_v26, %v352_v22  ;;  %v643_v34 = vunpack.c.l.b16 %v605_v27  ;;  %1407 = vmatpush.bf16.msrb.mxu2 %v1954_v16 }
 0x10e   :  { %v2393_v35 = vunpack.c.l.b16 %v946_v28 }
 0x10f   :  { %v494_v36 = vadd.f32 %v2263_v31, %v474_v32  ;;  %v745_v37 = vpack.c.b16 %v643_v34, %v642_v8 }
 0x110   :  { %v2398_v5 = vpack.c.b16 %v2393_v35, %v2385_v9 }
 0x111   :  { %v510_v38 = vmax.f32 %v494_v36, 0.0  ;;  %1843 = vmatmul.msk.bf16.gmra.mxu1 %vm80_vm0, %v745_v37  ;;  %1856 = vmatmul.msk.bf16.gmra.mxu2 %vm80_vm0, %v745_v37 }
 0x112   :  { %1871 = vmatmul.msk.bf16.gmra.mxu3 %vm80_vm0, %v2398_v5  ;;  %v332_v40 = vpop.f32.mrf.mxu2  ;;  %v586_v41 = vld [vmem:[#allocation2 + $0xe0] sm:$0xff]  ;;  %v228_v49 = vpop.f32.mrf.mxu1 }
 0x113   :  { %v927_v42 = vld [vmem:[#allocation2 + $0xe1] sm:$0xff]  ;;  %568 = vst.msk [vmem:[#allocation2 + $0xf1] sm:$0xff] %vm80_vm0, %v510_v38  ;;  %v353_v43 = vadd.f32 %v332_v40, %v226_v39  ;;  %v454_v44 = vpop.f32.mrf.mxu3  ;;  %v606_v47 = vpack.c.bf16 %v586_v41, %v586_v41  ;;  %v229_v56 = vadd.f32 %v228_v49, %v2211_v18 }
 0x114   :  { %v947_v48 = vpack.c.bf16 %v927_v42, %v927_v42  ;;  %v1955_v18 = vld [vmem:[%s2730_s3 + $0x28] sm:$0xff] }
 0x115   :  { %v475_v17 = vadd.f32 %v454_v44, %v353_v43  ;;  %v644_v51 = vunpack.c.l.b16 %v606_v47  ;;  %1517 = vmatpush.bf16.msrb.mxu3 %v1955_v18  ;;  %v1956_v44 = vld [vmem:[%s2730_s3 + $0x40] sm:$0xff] }
 0x116   :  { %v2406_v12 = vunpack.c.l.b16 %v947_v48  ;;  %1603 = vmatpush.bf16.msrb.mxu0 %v1956_v44 }
 0x117   :  { %v495_v52 = vadd.f32 %v2263_v31, %v475_v17  ;;  %v654_v53 = vpack.c.b16 %v644_v51, %v643_v34 }
 0x118   :  { %v1103_v54 = vpack.c.b16 %v2406_v12, %v2393_v35 }
 0x119   :  { %v511_v55 = vmax.f32 %v495_v52, 0.0  ;;  %1831 = vmatmul.msk.bf16.gmra.mxu0 %vm80_vm0, %v654_v53 }
 0x11a   :  { %v335_v57 = vpop.f32.mrf.mxu2  ;;  %v587_v58 = vld [vmem:[#allocation2 + $0xf0] sm:$0xff]  ;;  %v230_v14 = vpop.f32.mrf.mxu1 }
 0x11b   :  { %v928_v60 = vld [vmem:[#allocation2 + $0xf1] sm:$0xff]  ;;  %569 = vst.msk [vmem:[#allocation2 + $0x101] sm:$0xff] %vm80_vm0, %v511_v55  ;;  %v354_v61 = vadd.f32 %v335_v57, %v229_v56  ;;  %v457_v62 = vpop.f32.mrf.mxu3  ;;  %v607_v2 = vpack.c.bf16 %v587_v58, %v587_v58  ;;  %v231_v26 = vadd.f32 %v230_v14, %v2239_v24 }
 0x11c   :  { %v948_v3 = vpack.c.bf16 %v928_v60, %v928_v60  ;;  %v591_v57 = vld [vmem:[#allocation2 + $0x130] sm:$0xff]  ;;  %v1289_v60 = vld [vmem:[#allocation2 + $0x22] sm:$0xff] }
 0x11d   :  { %v476_v7 = vadd.f32 %v457_v62, %v354_v61  ;;  %v645_v8 = vunpack.c.l.b16 %v607_v2  ;;  %v611_v62 = vpack.c.bf16 %v591_v57, %v591_v57  ;;  %v1288_v2 = vld [vmem:[#allocation2 + $0x12] sm:$0xff] }
 0x11e   :  { %v2414_v23 = vunpack.c.l.b16 %v948_v3  ;;  %v1309_v3 = vpack.c.bf16 %v1289_v60, %v1289_v60 }
 0x11f   :  { %v496_v20 = vadd.f32 %v2263_v31, %v476_v7  ;;  %v746_v21 = vpack.c.b16 %v645_v8, %v644_v51  ;;  %v1308_v7 = vpack.c.bf16 %v1288_v2, %v1288_v2 }
 0x120   :  { %v2428_v10 = vpack.c.b16 %v2414_v23, %v2406_v12  ;;  %v1348_v11 = vunpack.c.l.b16 %v1309_v3 }
 0x121   :  { %v512_v22 = vmax.f32 %v496_v20, 0.0  ;;  %1844 = vmatmul.msk.bf16.gmra.mxu1 %vm80_vm0, %v746_v21  ;;  %1857 = vmatmul.msk.bf16.gmra.mxu2 %vm80_vm0, %v746_v21  ;;  %v1347_v14 = vunpack.c.l.b16 %v1308_v7 }
 0x122   :  { %1872 = vmatmul.msk.bf16.gmra.mxu3 %vm80_vm0, %v2428_v10  ;;  %v337_v27 = vpop.f32.mrf.mxu2  ;;  %v588_v28 = vld [vmem:[#allocation2 + $0x100] sm:$0xff] }
 0x123   :  { %v929_v30 = vld [vmem:[#allocation2 + $0x101] sm:$0xff]  ;;  %570 = vst.msk [vmem:[#allocation2 + $0x111] sm:$0xff] %vm80_vm0, %v512_v22  ;;  %v355_v32 = vadd.f32 %v337_v27, %v231_v26  ;;  %v608_v34 = vpack.c.bf16 %v588_v28, %v588_v28  ;;  %v459_v37 = vpop.f32.mrf.mxu3  ;;  %v1472_v20 = vpack.c.b16 %v1348_v11, %v1347_v14 }
 0x124   :  { %v949_v36 = vpack.c.bf16 %v929_v30, %v929_v30  ;;  %v1287_v22 = vld [vmem:[#allocation2 + $0x2] sm:$0xff] }
 0x125   :  { %v477_v38 = vadd.f32 %v459_v37, %v355_v32  ;;  %v646_v39 = vunpack.c.l.b16 %v608_v34  ;;  %v1291_v26 = vld [vmem:[#allocation2 + $0x42] sm:$0xff]  ;;  %v1307_v32 = vpack.c.bf16 %v1287_v22, %v1287_v22  ;;  %v1290_v34 = vld [vmem:[#allocation2 + $0x32] sm:$0xff] }
 0x126   :  { %v2436_v40 = vunpack.c.l.b16 %v949_v36  ;;  %v1311_v36 = vpack.c.bf16 %v1291_v26, %v1291_v26  ;;  %v1310_v37 = vpack.c.bf16 %v1290_v34, %v1290_v34  ;;  %v1295_v22 = vld [vmem:[#allocation2 + $0x82] sm:$0xff] }
 0x127   :  { %v497_v24 = vadd.f32 %v2263_v31, %v477_v38  ;;  %v655_v41 = vpack.c.b16 %v646_v39, %v645_v8  ;;  %v833_v8 = vunpack.c.l.b16 %v611_v62  ;;  %v1346_v38 = vunpack.c.l.b16 %v1307_v32  ;;  %v1294_v32 = vld [vmem:[#allocation2 + $0x72] sm:$0xff] }
 0x128   :  { %v1104_v42 = vpack.c.b16 %v2436_v40, %v2414_v23 }
 0x129   :  { %v513_v43 = vmax.f32 %v497_v24, 0.0  ;;  %1832 = vmatmul.msk.bf16.gmra.mxu0 %vm80_vm0, %v655_v41 }
 0x12a   :  { %v589_v47 = vld [vmem:[#allocation2 + $0x110] sm:$0xff] }
 0x12b   :  { %v930_v48 = vld [vmem:[#allocation2 + $0x111] sm:$0xff]  ;;  %571 = vst.msk [vmem:[#allocation2 + $0x121] sm:$0xff] %vm80_vm0, %v513_v43  ;;  %v609_v49 = vpack.c.bf16 %v589_v47, %v589_v47  ;;  %v1349_v43 = vunpack.c.l.b16 %v1310_v37  ;;  %v1362_v47 = vpack.c.b16 %v1347_v14, %v1346_v38 }
 0x12c   :  { %v950_v17 = vpack.c.bf16 %v930_v48, %v930_v48 }
 0x12d   :  { %v647_v51 = vunpack.c.l.b16 %v609_v49  ;;  %v1293_v49 = vld [vmem:[#allocation2 + $0x62] sm:$0xff] }
 0x12e   :  { %v2446_v31 = vunpack.c.l.b16 %v950_v17  ;;  %v1313_v57 = vpack.c.bf16 %v1293_v49, %v1293_v49 }
 0x12f   :  { %v747_v52 = vpack.c.b16 %v647_v51, %v646_v39 }
 0x130   :  { %v2450_v53 = vpack.c.b16 %v2446_v31, %v2436_v40  ;;  %v2478_v60 = vunpack.c.l.b16 %v1313_v57 }
 0x131   :  { %1845 = vmatmul.msk.bf16.gmra.mxu1 %vm80_vm0, %v747_v52  ;;  %1858 = vmatmul.msk.bf16.gmra.mxu2 %vm80_vm0, %v747_v52 }
 0x132   :  { %1873 = vmatmul.msk.bf16.gmra.mxu3 %vm80_vm0, %v2450_v53  ;;  %v590_v55 = vld [vmem:[#allocation2 + $0x120] sm:$0xff] }
 0x133   :  { %v610_v56 = vpack.c.bf16 %v590_v55, %v590_v55  ;;  %v1292_v55 = vld [vmem:[#allocation2 + $0x52] sm:$0xff]  ;;  %v931_v12 = vld [vmem:[#allocation2 + $0x121] sm:$0xff] }
 0x135   :  { %v648_v58 = vunpack.c.l.b16 %v610_v56 }
 0x137   :  { %v656_v61 = vpack.c.b16 %v648_v58, %v647_v51  ;;  %v835_v16 = vpack.c.b16 %v833_v8, %v648_v58 }
 0x139   :  { %1833 = vmatmul.msk.bf16.gmra.mxu0 %vm80_vm0, %v656_v61 }
 0x13e   :  { %v787_v18 = vpop.f32.mrf.mxu1 }
 0x141   :  { %1859 = vmatmul.msk.bf16.gmra.mxu2 %vm80_vm0, %v835_v16  ;;  %1894 = vmatmul.msk.bf16.vlgmr.msrb.gmra.mxu1 %vm80_vm0, %v2322_v1  ;;  %v2465_v1 = vunpack.c.l.b16 %v1311_v36  ;;  %v1314_v36 = vpack.c.bf16 %v1294_v32, %v1294_v32 }
 0x142   :  { %1922 = vmatmul.msk.bf16.vlgmr.msrb.gmra.mxu3 %vm80_vm0, %v1472_v20 }
 0x143   :  { %v1473_v48 = vpack.c.b16 %v2465_v1, %v1349_v43 }
 0x145   :  { %v1035_v21 = vpop.f32.mrf.mxu3 }
 0x146   :  { %v696_v27 = vpop.f32.mrf.mxu0  ;;  %v789_v28 = vpop.f32.mrf.mxu1 }
 0x147   :  { %v788_v30 = vadd.f32 %v787_v18, %v696_v27  ;;  %v2480_v18 = vpack.c.b16 %v1349_v43, %v1348_v11 }
 0x149   :  { %1880 = vmatmul.msk.bf16.vlgmr.msra.gmra.mxu0 %vm80_vm0, %v1098_v33 }
 0x14d   :  { %v1037_v39 = vpop.f32.mrf.mxu3 }
 0x14e   :  { %v698_v24 = vpop.f32.mrf.mxu0  ;;  %v792_v41 = vpop.f32.mrf.mxu1 }
 0x14f   :  { %v790_v44 = vadd.f32 %v789_v28, %v698_v24  ;;  %v941_v28 = vpack.c.bf16 %v921_v6, %v921_v6 }
 0x151   :  { %1895 = vmatmul.msk.bf16.gmra.mxu1 %vm80_vm0, %v2343_v15  ;;  %1908 = vmatmul.msk.bf16.vlgmr.msrb.gmra.mxu2 %vm80_vm0, %v1362_v47  ;;  %v1312_v15 = vpack.c.bf16 %v1292_v55, %v1292_v55  ;;  %v1096_v37 = vunpack.c.l.b16 %v941_v28 }
 0x152   :  { %1923 = vmatmul.msk.bf16.gmra.mxu3 %vm80_vm0, %v1473_v48  ;;  %v1353_v48 = vunpack.c.l.b16 %v1314_v36 }
 0x153   :  { %v1351_v7 = vunpack.c.l.b16 %v1312_v15  ;;  %v1298_v15 = vld [vmem:[#allocation2 + $0xb2] sm:$0xff] }
 0x154   :  { %v857_v0 = vpop.f32.mrf.mxu2 }
 0x155   :  { %v897_v29 = vadd.f32 %v857_v0, %v788_v30  ;;  %v1040_v33 = vpop.f32.mrf.mxu3  ;;  %v1474_v16 = vpack.c.b16 %v2478_v60, %v1351_v7 }
 0x156   :  { %v701_v17 = vpop.f32.mrf.mxu0  ;;  %v794_v51 = vpop.f32.mrf.mxu1 }
 0x157   :  { %v793_v52 = vadd.f32 %v792_v41, %v701_v17  ;;  %v2472_v56 = vadd.f32 %v1035_v21, %v897_v29 }
 0x159   :  { %1881 = vmatmul.msk.bf16.gmra.mxu0 %vm80_vm0, %v1099_v63  ;;  %v922_v63 = vld [vmem:[#allocation2 + $0x91] sm:$0xff] }
 0x15a   :  { %v942_v30 = vpack.c.bf16 %v922_v63, %v922_v63 }
 0x15c   :  { %v859_v58 = vpop.f32.mrf.mxu2  ;;  %v1206_v38 = vunpack.c.l.b16 %v942_v30 }
 0x15d   :  { %v898_v61 = vadd.f32 %v859_v58, %v790_v44  ;;  %v1042_v62 = vpop.f32.mrf.mxu3 }
 0x15e   :  { %v703_v2 = vpop.f32.mrf.mxu0  ;;  %v797_v3 = vpop.f32.mrf.mxu1  ;;  %v1208_v29 = vpack.c.b16 %v1206_v38, %v1096_v37 }
 0x15f   :  { %v795_v8 = vadd.f32 %v794_v51, %v703_v2  ;;  %v2482_v14 = vadd.f32 %v1037_v39, %v898_v61  ;;  %v1299_v51 = vld [vmem:[#allocation2 + $0xc2] sm:$0xff] }
 0x160   :  { %v1319_v61 = vpack.c.bf16 %v1299_v51, %v1299_v51 }
 0x161   :  { %1896 = vmatmul.msk.bf16.gmra.mxu1 %vm80_vm0, %v2364_v4  ;;  %1909 = vmatmul.msk.bf16.gmra.mxu2 %vm80_vm0, %v2480_v18  ;;  %v1315_v4 = vpack.c.bf16 %v1295_v22, %v1295_v22 }
 0x162   :  { %1924 = vmatmul.msk.bf16.gmra.mxu3 %vm80_vm0, %v1474_v16 }
 0x163   :  { %v2496_v24 = vunpack.c.l.b16 %v1315_v4  ;;  %v1300_v4 = vld [vmem:[#allocation2 + $0xd2] sm:$0xff] }
 0x164   :  { %v862_v46 = vpop.f32.mrf.mxu2 }
 0x165   :  { %v899_v20 = vadd.f32 %v862_v46, %v793_v52  ;;  %v1045_v21 = vpop.f32.mrf.mxu3  ;;  %v1475_v25 = vpack.c.b16 %v2496_v24, %v1353_v48 }
 0x166   :  { %v706_v11 = vpop.f32.mrf.mxu0  ;;  %v799_v26 = vpop.f32.mrf.mxu1 }
 0x167   :  { %v798_v27 = vadd.f32 %v797_v3, %v706_v11  ;;  %v2490_v34 = vadd.f32 %v1040_v33, %v899_v20  ;;  %v2499_v33 = vpack.c.b16 %v1351_v7, %v2465_v1  ;;  %v1101_v1 = vpack.c.b16 %v1096_v37, %v2359_v59  ;;  %v1297_v11 = vld [vmem:[#allocation2 + $0xa2] sm:$0xff] }
 0x168   :  { %v1356_v3 = vunpack.c.l.b16 %v1319_v61  ;;  %v2513_v20 = vpack.c.b16 %v1353_v48, %v2478_v60  ;;  %v1317_v60 = vpack.c.bf16 %v1297_v11, %v1297_v11 }
 0x169   :  { %1882 = vmatmul.msk.bf16.gmra.mxu0 %vm80_vm0, %v1100_v45 }
 0x16c   :  { %v864_v39 = vpop.f32.mrf.mxu2 }
 0x16d   :  { %v900_v41 = vadd.f32 %v864_v39, %v795_v8  ;;  %v1047_v43 = vpop.f32.mrf.mxu3  ;;  %v1354_v39 = vunpack.c.l.b16 %v1317_v60  ;;  %v1304_v60 = vld [vmem:[#allocation2 + $0x112] sm:$0xff] }
 0x16e   :  { %v708_v44 = vpop.f32.mrf.mxu0  ;;  %v802_v47 = vpop.f32.mrf.mxu1 }
 0x16f   :  { %v800_v0 = vadd.f32 %v799_v26, %v708_v44  ;;  %v2501_v49 = vadd.f32 %v1042_v62, %v900_v41  ;;  %v1318_v62 = vpack.c.bf16 %v1298_v15, %v1298_v15 }
 0x171   :  { %1897 = vmatmul.msk.bf16.gmra.mxu1 %vm80_vm0, %v1208_v29  ;;  %1910 = vmatmul.msk.bf16.gmra.mxu2 %vm80_vm0, %v2499_v33  ;;  %v1355_v6 = vunpack.c.l.b16 %v1318_v62 }
 0x172   :  { %1925 = vmatmul.msk.bf16.gmra.mxu3 %vm80_vm0, %v1475_v25 }
 0x173   :  { %v1476_v59 = vpack.c.b16 %v1356_v3, %v1355_v6  ;;  %v1366_v25 = vpack.c.b16 %v1355_v6, %v1354_v39 }
 0x174   :  { %v867_v19 = vpop.f32.mrf.mxu2 }
 0x175   :  { %v901_v45 = vadd.f32 %v867_v19, %v798_v27  ;;  %v1050_v17 = vpop.f32.mrf.mxu3  ;;  %v1301_v27 = vld [vmem:[#allocation2 + $0xe2] sm:$0xff] }
 0x176   :  { %v711_v52 = vpop.f32.mrf.mxu0  ;;  %v804_v55 = vpop.f32.mrf.mxu1  ;;  %v1321_v38 = vpack.c.bf16 %v1301_v27, %v1301_v27 }
 0x177   :  { %v803_v57 = vadd.f32 %v802_v47, %v711_v52  ;;  %v2509_v58 = vadd.f32 %v1045_v21, %v901_v45 }
 0x179   :  { %1883 = vmatmul.msk.bf16.gmra.mxu0 %vm80_vm0, %v1101_v1 }
 0x17c   :  { %v869_v2 = vpop.f32.mrf.mxu2 }
 0x17d   :  { %v902_v7 = vadd.f32 %v869_v2, %v800_v0  ;;  %v1052_v8 = vpop.f32.mrf.mxu3 }
 0x17e   :  { %v713_v16 = vpop.f32.mrf.mxu0  ;;  %v807_v46 = vpop.f32.mrf.mxu1 }
 0x17f   :  { %v805_v63 = vadd.f32 %v804_v55, %v713_v16  ;;  %v2515_v22 = vadd.f32 %v1047_v43, %v902_v7  ;;  %v2528_v43 = vunpack.c.l.b16 %v1321_v38  ;;  %v1324_v38 = vpack.c.bf16 %v1304_v60, %v1304_v60 }
 0x181   :  { %1898 = vmatmul.msk.bf16.gmra.mxu1 %vm80_vm0, %v2398_v5  ;;  %1911 = vmatmul.msk.bf16.gmra.mxu2 %vm80_vm0, %v2513_v20  ;;  %v1320_v5 = vpack.c.bf16 %v1300_v4, %v1300_v4 }
 0x182   :  { %1926 = vmatmul.msk.bf16.gmra.mxu3 %vm80_vm0, %v1476_v59 }
 0x183   :  { %v1357_v0 = vunpack.c.l.b16 %v1320_v5 }
 0x184   :  { %v872_v21 = vpop.f32.mrf.mxu2 }
 0x185   :  { %v903_v26 = vadd.f32 %v872_v21, %v803_v57  ;;  %v1055_v37 = vpop.f32.mrf.mxu3  ;;  %v1477_v45 = vpack.c.b16 %v2528_v43, %v1357_v0  ;;  %v1302_v57 = vld [vmem:[#allocation2 + $0xf2] sm:$0xff]  ;;  %v2543_v6 = vpack.c.b16 %v1357_v0, %v1356_v3  ;;  %v1361_v0 = vunpack.c.l.b16 %v1324_v38 }
 0x186   :  { %v716_v28 = vpop.f32.mrf.mxu0  ;;  %v809_v30 = vpop.f32.mrf.mxu1 }
 0x187   :  { %v808_v32 = vadd.f32 %v807_v46, %v716_v28  ;;  %v2522_v36 = vadd.f32 %v1050_v17, %v903_v26  ;;  %v1303_v17 = vld [vmem:[#allocation2 + $0x102] sm:$0xff] }
 0x188   :  { %v1323_v15 = vpack.c.bf16 %v1303_v17, %v1303_v17  ;;  %v1305_v26 = vld [vmem:[#allocation2 + $0x122] sm:$0xff] }
 0x189   :  { %1884 = vmatmul.msk.bf16.gmra.mxu0 %vm80_vm0, %v1102_v13 }
 0x18a   :  { %v1360_v2 = vunpack.c.l.b16 %v1323_v15 }
 0x18c   :  { %v874_v41 = vpop.f32.mrf.mxu2 }
 0x18d   :  { %v904_v44 = vadd.f32 %v874_v41, %v805_v63  ;;  %v1057_v50 = vpop.f32.mrf.mxu3 }
 0x18e   :  { %v718_v47 = vpop.f32.mrf.mxu0  ;;  %v812_v48 = vpop.f32.mrf.mxu1 }
 0x18f   :  { %v810_v29 = vadd.f32 %v809_v30, %v718_v47  ;;  %v2530_v19 = vadd.f32 %v1052_v8, %v904_v44  ;;  %v951_v30 = vpack.c.bf16 %v931_v12, %v931_v12 }
 0x191   :  { %1899 = vmatmul.msk.bf16.gmra.mxu1 %vm80_vm0, %v2428_v10  ;;  %1912 = vmatmul.msk.bf16.gmra.mxu2 %vm80_vm0, %v1366_v25  ;;  %v1322_v10 = vpack.c.bf16 %v1302_v57, %v1302_v57  ;;  %v1097_v5 = vunpack.c.l.b16 %v951_v30 }
 0x192   :  { %1927 = vmatmul.msk.bf16.gmra.mxu3 %vm80_vm0, %v1477_v45 }
 0x193   :  { %v1359_v16 = vunpack.c.l.b16 %v1322_v10 }
 0x194   :  { %v877_v9 = vpop.f32.mrf.mxu2 }
 0x195   :  { %v905_v13 = vadd.f32 %v877_v9, %v808_v32  ;;  %v1060_v61 = vpop.f32.mrf.mxu3  ;;  %v1478_v21 = vpack.c.b16 %v1360_v2, %v1359_v16  ;;  %v2561_v45 = vpack.c.b16 %v1359_v16, %v2528_v43  ;;  %v1105_v43 = vpack.c.b16 %v1097_v5, %v2446_v31 }
 0x196   :  { %v721_v51 = vpop.f32.mrf.mxu0  ;;  %v814_v52 = vpop.f32.mrf.mxu1 }
 0x197   :  { %v813_v55 = vadd.f32 %v812_v48, %v721_v51  ;;  %v2537_v1 = vadd.f32 %v1055_v37, %v905_v13  ;;  %v1325_v37 = vpack.c.bf16 %v1305_v26, %v1305_v26 }
 0x199   :  { %1885 = vmatmul.msk.bf16.gmra.mxu0 %vm80_vm0, %v1103_v54  ;;  %v932_v54 = vld [vmem:[#allocation2 + $0x131] sm:$0xff]  ;;  %v2558_v44 = vunpack.c.l.b16 %v1325_v37 }
 0x19a   :  { %v952_v32 = vpack.c.bf16 %v932_v54, %v932_v54 }
 0x19b   :  { %v1479_v40 = vpack.c.b16 %v2558_v44, %v1361_v0 }
 0x19c   :  { %v879_v62 = vpop.f32.mrf.mxu2  ;;  %v1207_v39 = vunpack.c.l.b16 %v952_v32 }
 0x19d   :  { %v906_v7 = vadd.f32 %v879_v62, %v810_v29  ;;  %v1062_v27 = vpop.f32.mrf.mxu3 }
 0x19e   :  { %v723_v8 = vpop.f32.mrf.mxu0  ;;  %v817_v59 = vpop.f32.mrf.mxu1  ;;  %v1209_v25 = vpack.c.b16 %v1207_v39, %v1097_v5 }
 0x19f   :  { %v815_v46 = vadd.f32 %v814_v52, %v723_v8  ;;  %v2545_v63 = vadd.f32 %v1057_v50, %v906_v7  ;;  %v1369_v7 = vpack.c.b16 %v1361_v0, %v1360_v2 }
 0x1a1   :  { %1900 = vmatmul.msk.bf16.gmra.mxu1 %vm80_vm0, %v2450_v53  ;;  %1913 = vmatmul.msk.bf16.gmra.mxu2 %vm80_vm0, %v2543_v6 }
 0x1a2   :  { %1928 = vmatmul.msk.bf16.gmra.mxu3 %vm80_vm0, %v1478_v21 }
 0x1a4   :  { %v882_v35 = vpop.f32.mrf.mxu2 }
 0x1a5   :  { %v907_v11 = vadd.f32 %v882_v35, %v813_v55  ;;  %v1065_v23 = vpop.f32.mrf.mxu3 }
 0x1a6   :  { %v726_v3 = vpop.f32.mrf.mxu0  ;;  %v819_v53 = vpop.f32.mrf.mxu1 }
 0x1a7   :  { %v818_v28 = vadd.f32 %v817_v59, %v726_v3  ;;  %v2552_v4 = vadd.f32 %v1060_v61, %v907_v11 }
 0x1a9   :  { %1886 = vmatmul.msk.bf16.gmra.mxu0 %vm80_vm0, %v1104_v42 }
 0x1ac   :  { %v884_v41 = vpop.f32.mrf.mxu2 }
 0x1ad   :  { %v908_v47 = vadd.f32 %v884_v41, %v815_v46  ;;  %v1067_v55 = vpop.f32.mrf.mxu3 }
 0x1ae   :  { %v728_v48 = vpop.f32.mrf.mxu0  ;;  %v822_v42 = vpop.f32.mrf.mxu1 }
 0x1af   :  { %v820_v29 = vadd.f32 %v819_v53, %v728_v48  ;;  %v2563_v50 = vadd.f32 %v1062_v27, %v908_v47 }
 0x1b1   :  { %1901 = vmatmul.msk.bf16.gmra.mxu1 %vm80_vm0, %v1209_v25  ;;  %1914 = vmatmul.msk.bf16.gmra.mxu2 %vm80_vm0, %v2561_v45 }
 0x1b2   :  { %1929 = vmatmul.msk.bf16.gmra.mxu3 %vm80_vm0, %v1479_v40 }
 0x1b4   :  { %v887_v9 = vpop.f32.mrf.mxu2 }
 0x1b5   :  { %v909_v13 = vadd.f32 %v887_v9, %v818_v28  ;;  %v1070_v16 = vpop.f32.mrf.mxu3 }
 0x1b6   :  { %v731_v17 = vpop.f32.mrf.mxu0  ;;  %v824_v10 = vpop.f32.mrf.mxu1 }
 0x1b7   :  { %v823_v51 = vadd.f32 %v822_v42, %v731_v17  ;;  %v1087_v52 = vadd.f32 %v1065_v23, %v909_v13  ;;  %v1306_v23 = vld [vmem:[#allocation2 + $0x132] sm:$0xff] }
 0x1b8   :  { %v1326_v42 = vpack.c.bf16 %v1306_v23, %v1306_v23 }
 0x1b9   :  { %1887 = vmatmul.msk.bf16.gmra.mxu0 %vm80_vm0, %v1105_v43 }
 0x1ba   :  { %v1581_v13 = vunpack.c.l.b16 %v1326_v42 }
 0x1bc   :  { %v889_v57 = vpop.f32.mrf.mxu2  ;;  %v1583_v43 = vpack.c.b16 %v1581_v13, %v2558_v44 }
 0x1bd   :  { %v910_v15 = vadd.f32 %v889_v57, %v820_v29  ;;  %v1072_v11 = vpop.f32.mrf.mxu3 }
 0x1be   :  { %v733_v61 = vpop.f32.mrf.mxu0  ;;  %v1231_v47 = vpop.f32.mrf.mxu1 }
 0x1bf   :  { %v825_v62 = vadd.f32 %v824_v10, %v733_v61  ;;  %v1088_v8 = vadd.f32 %v1067_v55, %v910_v15 }
 0x1c1   :  { %1915 = vmatmul.msk.bf16.gmra.mxu2 %vm80_vm0, %v1369_v7 }
 0x1c4   :  { %v892_v46 = vpop.f32.mrf.mxu2 }
 0x1c5   :  { %v911_v59 = vadd.f32 %v892_v46, %v823_v51  ;;  %v1519_v0 = vpop.f32.mrf.mxu3 }
 0x1c6   :  { %v1145_v21 = vpop.f32.mrf.mxu0  ;;  %v1233_v25 = vpop.f32.mrf.mxu1 }
 0x1c7   :  { %v1185_v35 = vadd.f32 %v1145_v21, %v2472_v56  ;;  %v1089_v31 = vadd.f32 %v1070_v16, %v911_v59  ;;  %v2631_v16 = vld [vmem:[%s2731_s4] ss:$0 sm:$0xff] }
 0x1c9   :  { %1936 = vmatmul.msk.bf16.vlgmr.msrb.gmra.mxu0 %vm80_vm0, %v2480_v18  ;;  %v1271_v10 = vadd.f32 %v1231_v47, %v1185_v35 }
 0x1cc   :  { %v894_v12 = vpop.f32.mrf.mxu2 }
 0x1cd   :  { %v912_v54 = vadd.f32 %v894_v12, %v825_v62 }
 0x1ce   :  { %v1147_v26 = vpop.f32.mrf.mxu0  ;;  %v1236_v9 = vpop.f32.mrf.mxu1 }
 0x1cf   :  { %v1186_v27 = vadd.f32 %v1147_v26, %v2482_v14  ;;  %v1090_v2 = vadd.f32 %v1072_v11, %v912_v54  ;;  %v1296_v14 = vld [vmem:[#allocation2 + $0x92] sm:$0xff] }
 0x1d1   :  { %v1272_v59 = vadd.f32 %v1233_v25, %v1186_v27 }
 0x1d6   :  { %v1150_v3 = vpop.f32.mrf.mxu0  ;;  %v1238_v55 = vpop.f32.mrf.mxu1 }
 0x1d7   :  { %v2578_v28 = vadd.f32 %v1150_v3, %v2490_v34  ;;  %v1316_v34 = vpack.c.bf16 %v1296_v14, %v1296_v14 }
 0x1d9   :  { %1937 = vmatmul.msk.bf16.gmra.mxu0 %vm80_vm0, %v2499_v33  ;;  %v1580_v53 = vunpack.c.l.b16 %v1316_v34 }
 0x1de   :  { %v1152_v30 = vpop.f32.mrf.mxu0  ;;  %v1241_v44 = vpop.f32.mrf.mxu1 }
 0x1df   :  { %v2583_v56 = vadd.f32 %v1152_v30, %v2501_v49  ;;  %v1582_v49 = vpack.c.b16 %v1580_v53, %v2496_v24  ;;  %v1273_v30 = vadd.f32 %v1236_v9, %v2578_v28 }
 0x1e6   :  { %v1155_v32 = vpop.f32.mrf.mxu0  ;;  %v1243_v14 = vpop.f32.mrf.mxu1 }
 0x1e7   :  { %v2586_v18 = vadd.f32 %v1155_v32, %v2509_v58 }
 0x1e9   :  { %1938 = vmatmul.msk.bf16.gmra.mxu0 %vm80_vm0, %v2513_v20  ;;  %v1275_v23 = vadd.f32 %v1241_v44, %v2586_v18 }
 0x1ee   :  { %v1157_v60 = vpop.f32.mrf.mxu0  ;;  %v1246_v47 = vpop.f32.mrf.mxu1 }
 0x1ef   :  { %v2591_v37 = vadd.f32 %v1157_v60, %v2515_v22 }
 0x1f6   :  { %v1160_v38 = vpop.f32.mrf.mxu0  ;;  %v1248_v13 = vpop.f32.mrf.mxu1 }
 0x1f7   :  { %v2594_v33 = vadd.f32 %v1160_v38, %v2522_v36 }
 0x1f9   :  { %1939 = vmatmul.msk.bf16.gmra.mxu0 %vm80_vm0, %v1582_v49  ;;  %v1277_v44 = vadd.f32 %v1246_v47, %v2594_v33 }
 0x1fe   :  { %v1162_v58 = vpop.f32.mrf.mxu0 }
 0x1ff   :  { %v2599_v5 = vadd.f32 %v1162_v58, %v2530_v19 }
 0x206   :  { %v1165_v20 = vpop.f32.mrf.mxu0 }
 0x207   :  { %v2602_v39 = vadd.f32 %v1165_v20, %v2537_v1  ;;  %v1409_v1 = vpop.f32.mrf.mxu2  ;;  %v1274_v20 = vadd.f32 %v1238_v55, %v2583_v56  ;;  %v1276_v55 = vadd.f32 %v1243_v14, %v2591_v37 }
 0x208   :  { %v1449_v62 = vadd.f32 %v1409_v1, %v1271_v10 }
 0x209   :  { %1940 = vmatmul.msk.bf16.gmra.mxu0 %vm80_vm0, %v2543_v6 }
 0x20e   :  { %v1167_v22 = vpop.f32.mrf.mxu0 }
 0x20f   :  { %v2607_v41 = vadd.f32 %v1167_v22, %v2545_v63  ;;  %v1411_v63 = vpop.f32.mrf.mxu2 }
 0x210   :  { %v1450_v12 = vadd.f32 %v1411_v63, %v1272_v59  ;;  %v1251_v59 = vpop.f32.mrf.mxu1 }
 0x216   :  { %v1170_v36 = vpop.f32.mrf.mxu0 }
 0x217   :  { %v2610_v24 = vadd.f32 %v1170_v36, %v2552_v4  ;;  %v1414_v17 = vpop.f32.mrf.mxu2 }
 0x218   :  { %v1451_v32 = vadd.f32 %v1414_v17, %v1273_v30  ;;  %v1253_v30 = vpop.f32.mrf.mxu1 }
 0x219   :  { %1941 = vmatmul.msk.bf16.gmra.mxu0 %vm80_vm0, %v2561_v45  ;;  %v1521_v45 = vpop.f32.mrf.mxu3 }
 0x21a   :  { %v1560_v26 = vadd.f32 %v1521_v45, %v1450_v12 }
 0x21e   :  { %v1172_v19 = vpop.f32.mrf.mxu0 }
 0x21f   :  { %v2615_v48 = vadd.f32 %v1172_v19, %v2563_v50  ;;  %v1416_v57 = vpop.f32.mrf.mxu2 }
 0x220   :  { %v1452_v36 = vadd.f32 %v1416_v57, %v1274_v20 }
 0x226   :  { %v1175_v29 = vpop.f32.mrf.mxu0 }
 0x227   :  { %v2617_v6 = vadd.f32 %v1175_v29, %v1087_v52  ;;  %v1524_v52 = vpop.f32.mrf.mxu3 }
 0x228   :  { %v1561_v49 = vadd.f32 %v1524_v52, %v1451_v32 }
 0x229   :  { %1942 = vmatmul.msk.bf16.gmra.mxu0 %vm80_vm0, %v1369_v7 }
 0x22e   :  { %v1177_v4 = vpop.f32.mrf.mxu0 }
 0x22f   :  { %v2620_v40 = vadd.f32 %v1177_v4, %v1088_v8  ;;  %v1526_v7 = vpop.f32.mrf.mxu3  ;;  %v1559_v8 = vadd.f32 %v1519_v0, %v1449_v62 }
 0x230   :  { %v1562_v25 = vadd.f32 %v1526_v7, %v1452_v36 }
 0x236   :  { %v1180_v50 = vpop.f32.mrf.mxu0 }
 0x237   :  { %v2622_v51 = vadd.f32 %v1180_v50, %v1089_v31  ;;  %v1419_v31 = vpop.f32.mrf.mxu2 }
 0x238   :  { %v1453_v4 = vadd.f32 %v1419_v31, %v1275_v23 }
 0x239   :  { %1943 = vmatmul.msk.bf16.gmra.mxu0 %vm80_vm0, %v1583_v43 }
 0x23e   :  { %v1182_v15 = vpop.f32.mrf.mxu0 }
 0x23f   :  { %v2626_v61 = vadd.f32 %v1182_v15, %v1090_v2  ;;  %v1529_v2 = vpop.f32.mrf.mxu3  ;;  %v1421_v34 = vpop.f32.mrf.mxu2 }
 0x240   :  { %v1563_v50 = vadd.f32 %v1529_v2, %v1453_v4  ;;  %v1454_v57 = vadd.f32 %v1421_v34, %v1276_v55 }
 0x246   :  { %v1605_v46 = vpop.f32.mrf.mxu0 }
 0x247   :  { %v1645_v21 = vadd.f32 %v1605_v46, %v1559_v8  ;;  %v1531_v22 = vpop.f32.mrf.mxu3  ;;  %v1424_v0 = vpop.f32.mrf.mxu2 }
 0x248   :  { %v1564_v8 = vadd.f32 %v1531_v22, %v1454_v57  ;;  %v1455_v31 = vadd.f32 %v1424_v0, %v1277_v44  ;;  %v1256_v22 = vpop.f32.mrf.mxu1 }
 0x249   :  { %v1665_v54 = vadd.f32 %v2631_v16, %v1645_v21 }
 0x24b   :  { %v1681_v11 = vmax.f32 %v1665_v54, 0.0 }
 0x24d   :  { %v1697_v35 = vpack.c.bf16 %v1681_v11, %v1681_v11 }
 0x24e   :  { %v1607_v3 = vpop.f32.mrf.mxu0 }
 0x24f   :  { %1714 = vst.msk [vmem:[%s2732_s5] sm:$0xf] %vm1713_vm2, %v1697_v35  ;;  %v1646_v27 = vadd.f32 %v1607_v3, %v1560_v26  ;;  %v1534_v45 = vpop.f32.mrf.mxu3  ;;  %v1426_v43 = vpop.f32.mrf.mxu2  ;;  %v1278_v3 = vadd.f32 %v1248_v13, %v2599_v5 }
 0x250   :  { %v1565_v35 = vadd.f32 %v1534_v45, %v1455_v31  ;;  %v1258_v4 = vpop.f32.mrf.mxu1 }
 0x251   :  { %v1666_v60 = vadd.f32 %v2631_v16, %v1646_v27  ;;  %v1456_v27 = vadd.f32 %v1426_v43, %v1278_v3 }
 0x253   :  { %v1682_v53 = vmax.f32 %v1666_v60, 0.0 }
 0x255   :  { %v1698_v38 = vpack.c.bf16 %v1682_v53, %v1682_v53 }
 0x256   :  { %v1610_v58 = vpop.f32.mrf.mxu0 }
 0x257   :  { %1715 = vst.msk [vmem:[%s2732_s5 + $0x4] sm:$0xf] %vm1713_vm2, %v1698_v38  ;;  %v1647_v28 = vadd.f32 %v1610_v58, %v1561_v49  ;;  %v1536_v62 = vpop.f32.mrf.mxu3  ;;  %v1429_v21 = vpop.f32.mrf.mxu2  ;;  %v1279_v49 = vadd.f32 %v1251_v59, %v2602_v39 }
 0x258   :  { %v1566_v53 = vadd.f32 %v1536_v62, %v1456_v27  ;;  %v1282_v62 = vadd.f32 %v1258_v4, %v2615_v48 }
 0x259   :  { %v1667_v19 = vadd.f32 %v2631_v16, %v1647_v28  ;;  %v1457_v20 = vadd.f32 %v1429_v21, %v1279_v49 }
 0x25b   :  { %v1683_v1 = vmax.f32 %v1667_v19, 0.0 }
 0x25d   :  { %v1699_v29 = vpack.c.bf16 %v1683_v1, %v1683_v1 }
 0x25e   :  { %v1612_v63 = vpop.f32.mrf.mxu0 }
 0x25f   :  { %1716 = vst.msk [vmem:[%s2732_s5 + $0x8] sm:$0xf] %vm1713_vm2, %v1699_v29  ;;  %v1648_v56 = vadd.f32 %v1612_v63, %v1562_v25  ;;  %v1539_v26 = vpop.f32.mrf.mxu3  ;;  %v1431_v14 = vpop.f32.mrf.mxu2  ;;  %v1280_v29 = vadd.f32 %v1253_v30, %v2607_v41 }
 0x260   :  { %v1567_v1 = vadd.f32 %v1539_v26, %v1457_v20 }
 0x261   :  { %v1668_v42 = vadd.f32 %v2631_v16, %v1648_v56  ;;  %v1458_v25 = vadd.f32 %v1431_v14, %v1280_v29 }
 0x263   :  { %v1684_v9 = vmax.f32 %v1668_v42, 0.0 }
 0x265   :  { %v1700_v17 = vpack.c.bf16 %v1684_v9, %v1684_v9 }
 0x266   :  { %v1615_v52 = vpop.f32.mrf.mxu0 }
 0x267   :  { %1717 = vst.msk [vmem:[%s2732_s5 + $0xc] sm:$0xf] %vm1713_vm2, %v1700_v17  ;;  %v1649_v18 = vadd.f32 %v1615_v52, %v1563_v50  ;;  %v1541_v58 = vpop.f32.mrf.mxu3  ;;  %v1434_v19 = vpop.f32.mrf.mxu2  ;;  %v1281_v17 = vadd.f32 %v1256_v22, %v2610_v24 }
 0x268   :  { %v1568_v45 = vadd.f32 %v1541_v58, %v1458_v25 }
 0x269   :  { %v1669_v15 = vadd.f32 %v2631_v16, %v1649_v18  ;;  %v1459_v50 = vadd.f32 %v1434_v19, %v1281_v17 }
 0x26b   :  { %v1685_v10 = vmax.f32 %v1669_v15, 0.0 }
 0x26d   :  { %v1701_v7 = vpack.c.bf16 %v1685_v10, %v1685_v10  ;;  %v1261_v10 = vpop.f32.mrf.mxu1 }
 0x26e   :  { %v1617_v46 = vpop.f32.mrf.mxu0 }
 0x26f   :  { %1718 = vst.msk [vmem:[%s2732_s5 + $0x10] sm:$0xf] %vm1713_vm2, %v1701_v7  ;;  %v1650_v37 = vadd.f32 %v1617_v46, %v1564_v8  ;;  %v1544_v23 = vpop.f32.mrf.mxu3  ;;  %v1436_v9 = vpop.f32.mrf.mxu2 }
 0x270   :  { %v1569_v57 = vadd.f32 %v1544_v23, %v1459_v50  ;;  %v1460_v8 = vadd.f32 %v1436_v9, %v1282_v62 }
 0x271   :  { %v1670_v12 = vadd.f32 %v2631_v16, %v1650_v37 }
 0x273   :  { %v1686_v54 = vmax.f32 %v1670_v12, 0.0  ;;  %v1283_v12 = vadd.f32 %v1261_v10, %v2617_v6 }
 0x275   :  { %v1702_v11 = vpack.c.bf16 %v1686_v54, %v1686_v54  ;;  %v1263_v54 = vpop.f32.mrf.mxu1 }
 0x276   :  { %v1620_v2 = vpop.f32.mrf.mxu0  ;;  %v1284_v27 = vadd.f32 %v1263_v54, %v2620_v40 }
 0x277   :  { %1719 = vst.msk [vmem:[%s2732_s5 + $0x14] sm:$0xf] %vm1713_vm2, %v1702_v11  ;;  %v1651_v33 = vadd.f32 %v1620_v2, %v1565_v35  ;;  %v1546_v55 = vpop.f32.mrf.mxu3  ;;  %v1439_v7 = vpop.f32.mrf.mxu2 }
 0x278   :  { %v1570_v37 = vadd.f32 %v1546_v55, %v1460_v8  ;;  %v1461_v11 = vadd.f32 %v1439_v7, %v1283_v12 }
 0x279   :  { %v1671_v32 = vadd.f32 %v2631_v16, %v1651_v33 }
 0x27b   :  { %v1687_v60 = vmax.f32 %v1671_v32, 0.0 }
 0x27d   :  { %v1703_v34 = vpack.c.bf16 %v1687_v60, %v1687_v60 }
 0x27e   :  { %v1622_v38 = vpop.f32.mrf.mxu0 }
 0x27f   :  { %1720 = vst.msk [vmem:[%s2732_s5 + $0x18] sm:$0xf] %vm1713_vm2, %v1703_v34  ;;  %v1652_v5 = vadd.f32 %v1622_v38, %v1566_v53  ;;  %v1549_v21 = vpop.f32.mrf.mxu3  ;;  %v1441_v26 = vpop.f32.mrf.mxu2 }
 0x280   :  { %v1571_v33 = vadd.f32 %v1549_v21, %v1461_v11  ;;  %v1462_v14 = vadd.f32 %v1441_v26, %v1284_v27  ;;  %v1266_v34 = vpop.f32.mrf.mxu1 }
 0x281   :  { %v1672_v28 = vadd.f32 %v2631_v16, %v1652_v5  ;;  %v1285_v20 = vadd.f32 %v1266_v34, %v2622_v51 }
 0x283   :  { %v1688_v36 = vmax.f32 %v1672_v28, 0.0 }
 0x285   :  { %v1704_v47 = vpack.c.bf16 %v1688_v36, %v1688_v36 }
 0x286   :  { %v1625_v0 = vpop.f32.mrf.mxu0 }
 0x287   :  { %1721 = vst.msk [vmem:[%s2732_s5 + $0x1c] sm:$0xf] %vm1713_vm2, %v1704_v47  ;;  %v1653_v39 = vadd.f32 %v1625_v0, %v1567_v1  ;;  %v1551_v32 = vpop.f32.mrf.mxu3  ;;  %v1444_v38 = vpop.f32.mrf.mxu2 }
 0x288   :  { %v1572_v5 = vadd.f32 %v1551_v32, %v1462_v14  ;;  %v1463_v28 = vadd.f32 %v1444_v38, %v1285_v20  ;;  %v1268_v47 = vpop.f32.mrf.mxu1 }
 0x289   :  { %v1673_v63 = vadd.f32 %v2631_v16, %v1653_v39  ;;  %v1286_v25 = vadd.f32 %v1268_v47, %v2626_v61 }
 0x28b   :  { %v1689_v56 = vmax.f32 %v1673_v63, 0.0 }
 0x28d   :  { %v1705_v42 = vpack.c.bf16 %v1689_v56, %v1689_v56 }
 0x28e   :  { %v1627_v13 = vpop.f32.mrf.mxu0 }
 0x28f   :  { %1722 = vst.msk [vmem:[%s2732_s5 + $0x20] sm:$0xf] %vm1713_vm2, %v1705_v42  ;;  %v1654_v41 = vadd.f32 %v1627_v13, %v1568_v45  ;;  %v1554_v36 = vpop.f32.mrf.mxu3  ;;  %v1446_v29 = vpop.f32.mrf.mxu2 }
 0x290   :  { %v1573_v0 = vadd.f32 %v1554_v36, %v1463_v28  ;;  %v1464_v63 = vadd.f32 %v1446_v29, %v1286_v25 }
 0x291   :  { %v1674_v43 = vadd.f32 %v2631_v16, %v1654_v41 }
 0x293   :  { %v1690_v52 = vmax.f32 %v1674_v43, 0.0 }
 0x295   :  { %v1706_v18 = vpack.c.bf16 %v1690_v52, %v1690_v52 }
 0x296   :  { %v1630_v15 = vpop.f32.mrf.mxu0 }
 0x297   :  { %1723 = vst.msk [vmem:[%s2732_s5 + $0x24] sm:$0xf] %vm1713_vm2, %v1706_v18  ;;  %v1655_v24 = vadd.f32 %v1630_v15, %v1569_v57  ;;  %v1556_v4 = vpop.f32.mrf.mxu3 }
 0x298   :  { %v1574_v45 = vadd.f32 %v1556_v4, %v1464_v63 }
 0x299   :  { %v1675_v46 = vadd.f32 %v2631_v16, %v1655_v24 }
 0x29b   :  { %v1691_v59 = vmax.f32 %v1675_v46, 0.0 }
 0x29d   :  { %v1707_v44 = vpack.c.bf16 %v1691_v59, %v1691_v59 }
 0x29e   :  { %v1632_v31 = vpop.f32.mrf.mxu0 }
 0x29f   :  { %1724 = vst.msk [vmem:[%s2732_s5 + $0x28] sm:$0xf] %vm1713_vm2, %v1707_v44  ;;  %v1656_v48 = vadd.f32 %v1632_v31, %v1570_v37 }
 0x2a1   :  { %v1676_v35 = vadd.f32 %v2631_v16, %v1656_v48 }
 0x2a3   :  { %v1692_v2 = vmax.f32 %v1676_v35, 0.0 }
 0x2a5   :  { %v1708_v3 = vpack.c.bf16 %v1692_v2, %v1692_v2 }
 0x2a6   :  { %v1635_v30 = vpop.f32.mrf.mxu0 }
 0x2a7   :  { %1725 = vst.msk [vmem:[%s2732_s5 + $0x2c] sm:$0xf] %vm1713_vm2, %v1708_v3  ;;  %v1657_v6 = vadd.f32 %v1635_v30, %v1571_v33 }
 0x2a9   :  { %v1677_v60 = vadd.f32 %v2631_v16, %v1657_v6 }
 0x2ab   :  { %v1693_v53 = vmax.f32 %v1677_v60, 0.0 }
 0x2ad   :  { %v1709_v49 = vpack.c.bf16 %v1693_v53, %v1693_v53 }
 0x2ae   :  { %v1637_v58 = vpop.f32.mrf.mxu0 }
 0x2af   :  { %1726 = vst.msk [vmem:[%s2732_s5 + $0x30] sm:$0xf] %vm1713_vm2, %v1709_v49  ;;  %v1658_v40 = vadd.f32 %v1637_v58, %v1572_v5 }
 0x2b1   :  { %v1678_v22 = vadd.f32 %v2631_v16, %v1658_v40 }
 0x2b3   :  { %v1694_v19 = vmax.f32 %v1678_v22, 0.0 }
 0x2b5   :  { %v1710_v1 = vpack.c.bf16 %v1694_v19, %v1694_v19 }
 0x2b6   :  { %v1640_v39 = vpop.f32.mrf.mxu0 }
 0x2b7   :  { %1727 = vst.msk [vmem:[%s2732_s5 + $0x34] sm:$0xf] %vm1713_vm2, %v1710_v1  ;;  %v1659_v51 = vadd.f32 %v1640_v39, %v1573_v0 }
 0x2b9   :  { %v1679_v23 = vadd.f32 %v2631_v16, %v1659_v51 }
 0x2bb   :  { %v1695_v56 = vmax.f32 %v1679_v23, 0.0 }
 0x2bd   :  { %v1711_v42 = vpack.c.bf16 %v1695_v56, %v1695_v56 }
 0x2be   :  { %v1642_v9 = vpop.f32.mrf.mxu0 }
 0x2bf   :  { %1728 = vst.msk [vmem:[%s2732_s5 + $0x38] sm:$0xf] %vm1713_vm2, %v1711_v42  ;;  %v1660_v61 = vadd.f32 %v1642_v9, %v1574_v45 }
 0x2c1   :  { %v1680_v13 = vadd.f32 %v2631_v16, %v1660_v61 }
 0x2c3   :  { %v1696_v17 = vmax.f32 %v1680_v13, 0.0 }
 0x2c5   :  { %v1712_v41 = vpack.c.bf16 %v1696_v17, %v1696_v17 }
 0x2c7   :  { %1729 = vst.msk [vmem:[%s2732_s5 + $0x3c] sm:$0xf] %vm1713_vm2, %v1712_v41 }

</bundles_post_ra>
